<compile_context>
chip_gen: v7x
topology: tpu7x:2x2x1
jax: 0.10.0
libtpu: 0.0.40
codegen_flags: <defaults>
</compile_context>

<pallas_src>
import functools

import jax
import jax.numpy as jnp
from jax import lax
from jax.experimental import pallas as pl
from jax.experimental.pallas import tpu as pltpu

LN_EPS = 1e-5                       # PyTorch nn.LayerNorm default eps
_INV_SQRT2 = 0.7071067811865476     # 1/sqrt(2) for exact-erf GELU
_SQRT_2_OVER_PI = 0.7978845608028654


def _round_up(x, m):
    return ((x + m - 1) // m) * m


def _vmem_capacity_bytes():
    """Physical VMEM per core; conservative (v7x-sized) fallback if the query fails."""
    try:
        cap = int(pltpu.get_tpu_info().vmem_capacity_bytes)
        if cap > 0:
            return cap
    except Exception:
        pass
    return 64 * 1024 * 1024


def _gelu(h, approximate):
    if approximate:
        # tanh-approx GELU: tanh lowers to the EUP slot -> relieves VALU pressure (v6e/v7x).
        return 0.5 * h * (1.0 + jnp.tanh(_SQRT_2_OVER_PI * (h + 0.044715 * h * h * h)))
    # Exact erf formulation == PyTorch nn.GELU() default.
    return 0.5 * h * (1.0 + lax.erf(h * _INV_SQRT2))


def _layernorm_f32(x_f32, gamma, beta):
    mu = jnp.mean(x_f32, axis=-1, keepdims=True)
    xc = x_f32 - mu
    var = jnp.mean(xc * xc, axis=-1, keepdims=True)        # biased variance (PyTorch)
    return xc * lax.rsqrt(var + LN_EPS) * gamma + beta


# ----------------------------------------------------------------------------------------------
# Kernels
# ----------------------------------------------------------------------------------------------
def _ffn_fused_kernel(x_ref, gamma_ref, beta_ref, w1_ref, b1_ref, w2_ref, b2_ref, o_ref,
                      *, approximate_gelu):
    """Weights-resident fast path. Grid = (row_tiles,); weights have constant index maps."""
    y = _layernorm_f32(x_ref[...].astype(jnp.float32), gamma_ref[...], beta_ref[...])
    h = jnp.dot(y.astype(jnp.bfloat16), w1_ref[...],
                preferred_element_type=jnp.float32) + b1_ref[...]
    g = _gelu(h, approximate_gelu)
    # Dropout(p=0.0) is the identity -> no-op.
    out = jnp.dot(g.astype(jnp.bfloat16), w2_ref[...],
                  preferred_element_type=jnp.float32) + b2_ref[...]
    o_ref[...] = out.astype(o_ref.dtype)


def _ffn_tiled_kernel(x_ref, gamma_ref, beta_ref, w1_ref, b1_ref, w2_ref, b2_ref, o_ref,
                      y_ref, acc_ref, *, approximate_gelu):
    """General path. Grid = (row_tiles, hidden_tiles): rows parallel, hidden arbitrary."""
    j = pl.program_id(1)

    # Once per row tile: LayerNorm into a bf16 VMEM scratch (MXU operand).
    @pl.when(j == 0)
    def _():
        y = _layernorm_f32(x_ref[...].astype(jnp.float32), gamma_ref[...], beta_ref[...])
        y_ref[...] = y.astype(jnp.bfloat16)

    # Linear(dim -> hidden chunk), bf16 operands, f32 accumulation.
    h = jnp.dot(y_ref[...], w1_ref[...], preferred_element_type=jnp.float32) + b1_ref[...]
    g = _gelu(h, approximate_gelu)
    # Dropout(p=0.0) is the identity -> no-op.
    p = jnp.dot(g.astype(jnp.bfloat16), w2_ref[...], preferred_element_type=jnp.float32)

    # First chunk writes the accumulator, later chunks accumulate (no zero-init round trip).
    @pl.when(j == 0)
    def _():
        acc_ref[...] = p

    @pl.when(j > 0)
    def _():
        acc_ref[...] += p

    @pl.when(j == pl.num_programs(1) - 1)
    def _():
        o_ref[...] = (acc_ref[...] + b2_ref[...]).astype(o_ref.dtype)


# ----------------------------------------------------------------------------------------------
# Wrapper
# ----------------------------------------------------------------------------------------------
def prepare_params(params):
    """One-time conversion outside the hot path: weights -> bf16, biases/LN params -> f32.

    Doing this once (instead of inside every feed_forward call) removes a full f32 read +
    bf16 write of both weight matrices from HBM per call.
    """
    gamma, beta, w1, b1, w2, b2 = params
    return (gamma.astype(jnp.float32), beta.astype(jnp.float32),
            w1.astype(jnp.bfloat16), b1.astype(jnp.float32),
            w2.astype(jnp.bfloat16), b2.astype(jnp.float32))


@functools.partial(jax.jit, static_argnames=("block_rows", "block_hidden",
                                             "approximate_gelu", "weights_resident"))
def feed_forward(x, params, block_rows=512, block_hidden=512,
                 approximate_gelu=False, weights_resident=None):
    """x: (B, N, dim). params: (gamma, beta, w1[dim,hidden], b1, w2[hidden,dim], b2)."""
    gamma, beta, w1, b1, w2, b2 = params
    B, N, dim = x.shape
    hidden = w1.shape[1]
    M = B * N

    cap = _vmem_capacity_bytes()
    budget = max(24 << 20, int(cap * 0.70))                      # tile-selection budget
    vmem_limit = max(32 << 20, min(int(cap * 0.90), 128 << 20))  # explicit scoped-VMEM limit

    x_bytes = x.dtype.itemsize
    out_bytes = x.dtype.itemsize
    H128 = _round_up(hidden, 128)
    w_bytes_bf16 = 2 * dim * H128 * 2                            # W1 + W2 in bf16

    # ---- row tile: multiple of 128 (MXU-friendly on all gens), >= 16 for bf16 packing ----
    tm_cap = 16 if M <= 16 else _round_up(M, 128)
    tm = max(16, min(_round_up(block_rows, 128), tm_cap))
    # v7x megacore: prefer >= 2 row tiles when there is enough work.
    if M > 256 and _round_up(M, tm) // tm < 2:
        tm = _round_up(max(128, -(-M // 2)), 128)

    # ---- path selection + VMEM-budgeted tile shrink ----
    def fused_bytes(tm_):
        return (2 * w_bytes_bf16                    # resident weights (conservatively x2)
                + 2 * tm_ * dim * x_bytes           # x tile, double buffered
                + 2 * tm_ * dim * out_bytes         # out tile, double buffered
                + tm_ * dim * (4 + 2)               # LN f32 temp + bf16 y temp
                + tm_ * H128 * (4 + 2)              # h f32 + g bf16 temps
                + 2 * (3 * dim + H128) * 4)         # gamma/beta/b2/b1

    if weights_resident is None:
        use_fused = fused_bytes(min(tm, 128)) <= budget
    else:
        use_fused = bool(weights_resident)

    if use_fused:
        th = H128
        while fused_bytes(tm) > budget and tm > 16:
            tm = 16 if tm <= 128 else tm - 128
    else:
        th = min(_round_up(block_hidden, 128), H128)

        def tiled_bytes(tm_):
            return (2 * 2 * dim * th * 2            # W1 + W2 chunks bf16, double buffered
                    + 2 * tm_ * dim * x_bytes
                    + 2 * tm_ * dim * out_bytes
                    + tm_ * dim * (2 + 4 + 4)       # y scratch bf16 + acc f32 + LN f32 temp
                    + tm_ * th * (4 + 2)            # h f32 + g bf16 temps
                    + 2 * (3 * dim + th) * 4)

        while tiled_bytes(tm) > budget and tm > 16:
            tm = 16 if tm <= 128 else tm - 128

    M_pad = _round_up(M, tm)
    H_pad = _round_up(hidden, th)

    # ---- operand prep (cheap / no-op when params came from prepare_params) ----
    w1b = w1 if w1.dtype == jnp.bfloat16 else w1.astype(jnp.bfloat16)
    w2b = w2 if w2.dtype == jnp.bfloat16 else w2.astype(jnp.bfloat16)
    b1_2 = b1.astype(jnp.float32).reshape(1, hidden)
    if H_pad != hidden:
        w1b = jnp.pad(w1b, ((0, 0), (0, H_pad - hidden)))
        b1_2 = jnp.pad(b1_2, ((0, 0), (0, H_pad - hidden)))
        w2b = jnp.pad(w2b, ((0, H_pad - hidden), (0, 0)))

    gamma2 = gamma.astype(jnp.float32).reshape(1, dim)
    beta2 = beta.astype(jnp.float32).reshape(1, dim)
    b2_2 = b2.astype(jnp.float32).reshape(1, dim)

    x2d = x.reshape(M, dim)
    if M_pad != M:
        x2d = jnp.pad(x2d, ((0, M_pad - M), (0, 0)))

    if use_fused:
        grid = (M_pad // tm,)
        out2d = pl.pallas_call(
            functools.partial(_ffn_fused_kernel, approximate_gelu=approximate_gelu),
            out_shape=jax.ShapeDtypeStruct((M_pad, dim), x.dtype),
            grid_spec=pltpu.PrefetchScalarGridSpec(
                num_scalar_prefetch=0,
                grid=grid,
                in_specs=[
                    pl.BlockSpec((tm, dim), lambda i: (i, 0)),       # x rows
                    pl.BlockSpec((1, dim), lambda i: (0, 0)),        # gamma
                    pl.BlockSpec((1, dim), lambda i: (0, 0)),        # beta
                    pl.BlockSpec((dim, H_pad), lambda i: (0, 0)),    # W1 (constant -> DMA once)
                    pl.BlockSpec((1, H_pad), lambda i: (0, 0)),      # b1
                    pl.BlockSpec((H_pad, dim), lambda i: (0, 0)),    # W2 (constant -> DMA once)
                    pl.BlockSpec((1, dim), lambda i: (0, 0)),        # b2
                ],
                out_specs=pl.BlockSpec((tm, dim), lambda i: (i, 0)),
            ),
            compiler_params=pltpu.CompilerParams(
                dimension_semantics=("parallel",),
                vmem_limit_bytes=vmem_limit,
            ),
        )(x2d, gamma2, beta2, w1b, b1_2, w2b, b2_2)
    else:
        grid = (M_pad // tm, H_pad // th)
        out2d = pl.pallas_call(
            functools.partial(_ffn_tiled_kernel, approximate_gelu=approximate_gelu),
            out_shape=jax.ShapeDtypeStruct((M_pad, dim), x.dtype),
            grid_spec=pltpu.PrefetchScalarGridSpec(
                num_scalar_prefetch=0,
                grid=grid,
                in_specs=[
                    pl.BlockSpec((tm, dim), lambda i, j: (i, 0)),    # x rows
                    pl.BlockSpec((1, dim), lambda i, j: (0, 0)),     # gamma
                    pl.BlockSpec((1, dim), lambda i, j: (0, 0)),     # beta
                    pl.BlockSpec((dim, th), lambda i, j: (0, j)),    # W1 chunk (bf16)
                    pl.BlockSpec((1, th), lambda i, j: (0, j)),      # b1 chunk
                    pl.BlockSpec((th, dim), lambda i, j: (j, 0)),    # W2 chunk (bf16)
                    pl.BlockSpec((1, dim), lambda i, j: (0, 0)),     # b2
                ],
                out_specs=pl.BlockSpec((tm, dim), lambda i, j: (i, 0)),
                scratch_shapes=[
                    pltpu.VMEM((tm, dim), jnp.bfloat16),             # LayerNorm output
                    pltpu.VMEM((tm, dim), jnp.float32),              # GEMM2 accumulator
                ],
            ),
            compiler_params=pltpu.CompilerParams(
                dimension_semantics=("parallel", "arbitrary"),
                vmem_limit_bytes=vmem_limit,
            ),
        )(x2d, gamma2, beta2, w1b, b1_2, w2b, b2_2)

    if M_pad != M:
        out2d = out2d[:M]
    return out2d.reshape(B, N, dim)


# ----------------------------------------------------------------------------------------------
# Reference / test harness
# ----------------------------------------------------------------------------------------------
def init_params(key, dim, hidden_dim):
    """Deterministic parameter init mirroring the shapes of the PyTorch module."""
    k1, k2, k3, k4 = jax.random.split(key, 4)
    gamma = jnp.ones((dim,), jnp.float32)                 # LayerNorm weight
    beta = jnp.zeros((dim,), jnp.float32)                 # LayerNorm bias
    # nn.Linear weights stored transposed to (in, out) for y @ W.
    w1 = jax.random.normal(k1, (dim, hidden_dim), jnp.float32) * (1.0 / jnp.sqrt(dim))
    b1 = jax.random.normal(k2, (hidden_dim,), jnp.float32) * 0.02
    w2 = jax.random.normal(k3, (hidden_dim, dim), jnp.float32) * (1.0 / jnp.sqrt(hidden_dim))
    b2 = jax.random.normal(k4, (dim,), jnp.float32) * 0.02
    return (gamma, beta, w1, b1, w2, b2)


def _reference(x, params, approximate_gelu=False):
    gamma, beta, w1, b1, w2, b2 = params
    xf = x.astype(jnp.float32)
    mu = jnp.mean(xf, axis=-1, keepdims=True)
    var = jnp.mean((xf - mu) ** 2, axis=-1, keepdims=True)
    y = (xf - mu) / jnp.sqrt(var + LN_EPS) * gamma + beta
    h = y @ w1 + b1
    g = _gelu(h, approximate_gelu)
    return g @ w2 + b2


if __name__ == "__main__":
    # Small, lane-dense test shapes (dim multiple of 128). Exercises row padding (M=48 -> 128),
    # the weights-resident fused path, the general tiled path (forced, 2 hidden chunks), and
    # the tanh-approx GELU option.
    B, N, DIM, HIDDEN = 2, 24, 128, 512
    key = jax.random.PRNGKey(0)
    kx, kp = jax.random.split(key)
    x = jax.random.normal(kx, (B, N, DIM), jnp.float32)
    params = init_params(kp, DIM, HIDDEN)
    prepared = prepare_params(params)          # bf16 weights, once, outside the hot path

    ref = _reference(x, params)

    # 1) Default: weights-resident fused path, exact-erf GELU (PyTorch semantics).
    out = jax.block_until_ready(feed_forward(x, prepared))
    assert out.shape == (B, N, DIM)
    err = float(jnp.max(jnp.abs(out - ref)))
    assert jnp.allclose(out, ref, atol=5e-2, rtol=2e-2), f"fused path mismatch: {err}"

    # 2) General tiled path (forced): two hidden chunks, exercises the resident accumulator.
    out_t = jax.block_until_ready(
        feed_forward(x, prepared, block_rows=128, block_hidden=256, weights_resident=False))
    err_t = float(jnp.max(jnp.abs(out_t - ref)))
    assert jnp.allclose(out_t, ref, atol=5e-2, rtol=2e-2), f"tiled path mismatch: {err_t}"

    # 3) tanh-approx GELU (EUP offload option for v6e/v7x), checked against a tanh reference.
    ref_tanh = _reference(x, params, approximate_gelu=True)
    out_a = jax.block_until_ready(feed_forward(x, prepared, approximate_gelu=True))
    err_a = float(jnp.max(jnp.abs(out_a - ref_tanh)))
    assert jnp.allclose(out_a, ref_tanh, atol=5e-2, rtol=2e-2), f"tanh path mismatch: {err_a}"

    print("KERNEL_OK")
</pallas_src>

<mosaic_0001>
module attributes {stable_mosaic.version = 11 : i64} {
  func.func @_ffn_fused_kernel(%arg0: i32, %arg1: memref<128x128xf32, #tpu.memory_space<vmem>>, %arg2: memref<1x128xf32, #tpu.memory_space<vmem>>, %arg3: memref<1x128xf32, #tpu.memory_space<vmem>>, %arg4: memref<128x512xbf16, #tpu.memory_space<vmem>>, %arg5: memref<1x512xf32, #tpu.memory_space<vmem>>, %arg6: memref<512x128xbf16, #tpu.memory_space<vmem>>, %arg7: memref<1x128xf32, #tpu.memory_space<vmem>>, %arg8: memref<128x128xf32, #tpu.memory_space<vmem>>) attributes {dimension_semantics = [#tpu.dimension_semantics<parallel>], iteration_bounds = array<i64: 1>, scalar_prefetch = 0 : i64, scratch_operands = 0 : i64, tpu.core_type = #tpu.core_type<tc>, window_params = [{transform_indices = @transform_0, window_bounds = array<i64: 128, 128>}, {pipeline_mode = #tpu.pipeline_mode<synchronous>, transform_indices = @transform_1, window_bounds = array<i64: 1, 128>}, {pipeline_mode = #tpu.pipeline_mode<synchronous>, transform_indices = @transform_2, window_bounds = array<i64: 1, 128>}, {pipeline_mode = #tpu.pipeline_mode<synchronous>, transform_indices = @transform_3, window_bounds = array<i64: 128, 512>}, {pipeline_mode = #tpu.pipeline_mode<synchronous>, transform_indices = @transform_4, window_bounds = array<i64: 1, 512>}, {pipeline_mode = #tpu.pipeline_mode<synchronous>, transform_indices = @transform_5, window_bounds = array<i64: 512, 128>}, {pipeline_mode = #tpu.pipeline_mode<synchronous>, transform_indices = @transform_6, window_bounds = array<i64: 1, 128>}, {transform_indices = @transform_7, window_bounds = array<i64: 128, 128>}]} {
    %c0 = arith.constant 0 : index
    %c0_0 = arith.constant 0 : index
    %0 = vector.load %arg1[%c0, %c0_0] : memref<128x128xf32, #tpu.memory_space<vmem>>, vector<128x128xf32>
    %c0_1 = arith.constant 0 : index
    %c0_2 = arith.constant 0 : index
    %1 = vector.load %arg2[%c0_1, %c0_2] : memref<1x128xf32, #tpu.memory_space<vmem>>, vector<1x128xf32>
    %c0_3 = arith.constant 0 : index
    %c0_4 = arith.constant 0 : index
    %2 = vector.load %arg3[%c0_3, %c0_4] : memref<1x128xf32, #tpu.memory_space<vmem>>, vector<1x128xf32>
    %cst = arith.constant dense<0.000000e+00> : vector<128xf32>
    %3 = vector.multi_reduction <add>, %0, %cst [1] : vector<128x128xf32> to vector<128xf32>
    %4 = vector.shape_cast %3 : vector<128xf32> to vector<128x1xf32>
    %cst_5 = arith.constant 1.280000e+02 : f32
    %5 = vector.broadcast %cst_5 : f32 to vector<128x1xf32>
    %6 = arith.divf %4, %5 : vector<128x1xf32>
    %7 = vector.broadcast %6 : vector<128x1xf32> to vector<128x128xf32>
    %8 = arith.subf %0, %7 : vector<128x128xf32>
    %9 = arith.mulf %8, %8 : vector<128x128xf32>
    %cst_6 = arith.constant dense<0.000000e+00> : vector<128xf32>
    %10 = vector.multi_reduction <add>, %9, %cst_6 [1] : vector<128x128xf32> to vector<128xf32>
    %11 = vector.shape_cast %10 : vector<128xf32> to vector<128x1xf32>
    %cst_7 = arith.constant 1.280000e+02 : f32
    %12 = vector.broadcast %cst_7 : f32 to vector<128x1xf32>
    %13 = arith.divf %11, %12 : vector<128x1xf32>
    %cst_8 = arith.constant 9.99999974E-6 : f32
    %14 = vector.broadcast %cst_8 : f32 to vector<128x1xf32>
    %15 = arith.addf %13, %14 : vector<128x1xf32>
    %16 = math.rsqrt %15 : vector<128x1xf32>
    %17 = vector.broadcast %16 : vector<128x1xf32> to vector<128x128xf32>
    %18 = arith.mulf %8, %17 : vector<128x128xf32>
    %19 = vector.broadcast %1 : vector<1x128xf32> to vector<128x128xf32>
    %20 = arith.mulf %18, %19 : vector<128x128xf32>
    %21 = vector.broadcast %2 : vector<1x128xf32> to vector<128x128xf32>
    %22 = arith.addf %20, %21 : vector<128x128xf32>
    %23 = arith.truncf %22 : vector<128x128xf32> to vector<128x128xbf16>
    %c0_9 = arith.constant 0 : index
    %c0_10 = arith.constant 0 : index
    %24 = vector.load %arg4[%c0_9, %c0_10] : memref<128x512xbf16, #tpu.memory_space<vmem>>, vector<128x512xbf16>
    %cst_11 = arith.constant dense<0.000000e+00> : vector<128x512xf32>
    %25 = tpu.matmul %23, %24, %cst_11 {dimension_numbers = #tpu.dot_dimension_numbers<[1], [0], [0], [1], [0, 0, 1, 1], [], []>} : vector<128x128xbf16>, vector<128x512xbf16>, vector<128x512xf32> -> vector<128x512xf32>
    %c0_12 = arith.constant 0 : index
    %c0_13 = arith.constant 0 : index
    %26 = vector.load %arg5[%c0_12, %c0_13] : memref<1x512xf32, #tpu.memory_space<vmem>>, vector<1x512xf32>
    %27 = vector.broadcast %26 : vector<1x512xf32> to vector<128x512xf32>
    %28 = arith.addf %25, %27 : vector<128x512xf32>
    %cst_14 = arith.constant 5.000000e-01 : f32
    %29 = vector.broadcast %cst_14 : f32 to vector<128x512xf32>
    %30 = arith.mulf %29, %28 : vector<128x512xf32>
    %cst_15 = arith.constant 0.707106769 : f32
    %31 = vector.broadcast %cst_15 : f32 to vector<128x512xf32>
    %32 = arith.mulf %28, %31 : vector<128x512xf32>
    %33 = math.erf %32 : vector<128x512xf32>
    %cst_16 = arith.constant 1.000000e+00 : f32
    %34 = vector.broadcast %cst_16 : f32 to vector<128x512xf32>
    %35 = arith.addf %34, %33 : vector<128x512xf32>
    %36 = arith.mulf %30, %35 : vector<128x512xf32>
    %37 = arith.truncf %36 : vector<128x512xf32> to vector<128x512xbf16>
    %c0_17 = arith.constant 0 : index
    %c0_18 = arith.constant 0 : index
    %38 = vector.load %arg6[%c0_17, %c0_18] : memref<512x128xbf16, #tpu.memory_space<vmem>>, vector<512x128xbf16>
    %cst_19 = arith.constant dense<0.000000e+00> : vector<128x128xf32>
    %39 = tpu.matmul %37, %38, %cst_19 {dimension_numbers = #tpu.dot_dimension_numbers<[1], [0], [0], [1], [0, 0, 1, 1], [], []>} : vector<128x512xbf16>, vector<512x128xbf16>, vector<128x128xf32> -> vector<128x128xf32>
    %c0_20 = arith.constant 0 : index
    %c0_21 = arith.constant 0 : index
    %40 = vector.load %arg7[%c0_20, %c0_21] : memref<1x128xf32, #tpu.memory_space<vmem>>, vector<1x128xf32>
    %41 = vector.broadcast %40 : vector<1x128xf32> to vector<128x128xf32>
    %42 = arith.addf %39, %41 : vector<128x128xf32>
    %c0_22 = arith.constant 0 : index
    %c0_23 = arith.constant 0 : index
    %43 = vector.load %arg8[%c0_22, %c0_23] : memref<128x128xf32, #tpu.memory_space<vmem>>, vector<128x128xf32>
    tpu.vector_store %arg8[%c0_22, %c0_23], %42 {strides = array<i32>} : memref<128x128xf32, #tpu.memory_space<vmem>>, vector<128x128xf32>,
    return
  }
  func.func @transform_0(%arg0: i32) -> (i32, i32) {
    %c0_i32 = arith.constant 0 : i32
    %c0_i32_0 = arith.constant 0 : i32
    return %arg0, %c0_i32 : i32, i32
  }
  func.func @transform_1(%arg0: i32) -> (i32, i32) {
    %c0_i32 = arith.constant 0 : i32
    %c0_i32_0 = arith.constant 0 : i32
    %c0_i32_1 = arith.constant 0 : i32
    return %c0_i32, %c0_i32_0 : i32, i32
  }
  func.func @transform_2(%arg0: i32) -> (i32, i32) {
    %c0_i32 = arith.constant 0 : i32
    %c0_i32_0 = arith.constant 0 : i32
    %c0_i32_1 = arith.constant 0 : i32
    return %c0_i32, %c0_i32_0 : i32, i32
  }
  func.func @transform_3(%arg0: i32) -> (i32, i32) {
    %c0_i32 = arith.constant 0 : i32
    %c0_i32_0 = arith.constant 0 : i32
    %c0_i32_1 = arith.constant 0 : i32
    return %c0_i32, %c0_i32_0 : i32, i32
  }
  func.func @transform_4(%arg0: i32) -> (i32, i32) {
    %c0_i32 = arith.constant 0 : i32
    %c0_i32_0 = arith.constant 0 : i32
    %c0_i32_1 = arith.constant 0 : i32
    return %c0_i32, %c0_i32_0 : i32, i32
  }
  func.func @transform_5(%arg0: i32) -> (i32, i32) {
    %c0_i32 = arith.constant 0 : i32
    %c0_i32_0 = arith.constant 0 : i32
    %c0_i32_1 = arith.constant 0 : i32
    return %c0_i32, %c0_i32_0 : i32, i32
  }
  func.func @transform_6(%arg0: i32) -> (i32, i32) {
    %c0_i32 = arith.constant 0 : i32
    %c0_i32_0 = arith.constant 0 : i32
    %c0_i32_1 = arith.constant 0 : i32
    return %c0_i32, %c0_i32_0 : i32, i32
  }
  func.func @transform_7(%arg0: i32) -> (i32, i32) {
    %c0_i32 = arith.constant 0 : i32
    %c0_i32_0 = arith.constant 0 : i32
    return %arg0, %c0_i32 : i32, i32
  }
}

</mosaic_0001>

<bundles_post_ra>
// kernel: feed_forward.1
= control target key start
LH: loop header
LB: loop body
LE: loop exit
PB: predicated region body
PF: predicated region fallthrough
CT: control target
= control target key end

     0   :  { %12 = vsyncpa [#allocation3], 0  ;;  %s2926_s0 = inlined_call_operand.vmem [shape: f32[128,128], index: 0, kind: input, shape index: {}]   ;;  %s2927_s1 = inlined_call_operand.vmem [shape: f32[1,128], index: 1, kind: input, shape index: {}]   ;;  %s2928_s2 = inlined_call_operand.vmem [shape: f32[1,128], index: 2, kind: input, shape index: {}]   ;;  %s2929_s3 = inlined_call_operand.hbm [shape: bf16[128,512], index: 3, kind: input, shape index: {}]   ;;  %s2930_s4 = inlined_call_operand.vmem [shape: f32[1,512], index: 4, kind: input, shape index: {}]   ;;  %s2931_s5 = inlined_call_operand.hbm [shape: bf16[512,128], index: 5, kind: input, shape index: {}]   ;;  %s2932_s6 = inlined_call_operand.vmem [shape: f32[1,128], index: 6, kind: input, shape index: {}]   ;;  %s2933_s7 = inlined_call_operand.vmem [shape: f32[128,128], index: 7, kind: output, shape index: {}]  }
   0x1   :  { %13 = vsyncpa [#allocation5], 0  ;;  %s2063_s24 = smov [#allocation2]   ;;  %s2015_s28 = scalar_lea.hbm %s2929_s3, 4096 }
   0x2   :  { %s25_s25 = sshll.u32 %s2063_s24, 4  ;;  %p2016_p0 = scmp.ne.s32.totalorder %s2929_s3, %s2015_s28  ;;  %s26_s25 = int_to_ptr.vmem [resolvable:$true] %s25_s25 }
   0x3   :  { %p2019_p1 = scmp.lt.u32.totalorder %s2015_s28, %s2929_s3 }
   0x5   :  { %p2021_p2 = pnand %p2019_p1, %p2016_p0 }
   0x7   :  { %2024 = shalt.err (!%p2021_p2)
}
   0x8   :  { %s2025_s10 = scalar_lea.vmem %s26_s25, 4096  ;;  %p2030_p4 = scmp.lt.s32.totalorder %s26_s25, %s26_s25 }
   0x9   :  { %p2026_p3 = scmp.ne.s32.totalorder %s26_s25, %s2025_s10  ;;  %p2031_p5 = scmp.lt.s32.totalorder %s2025_s10, %s2025_s10 }
   0xb   :  { %p2032_p6 = por %p2031_p5, %p2030_p4 }
   0xd   :  { %p2033_p7 = pnand %p2032_p6, %p2026_p3 }
   0xf   :  { %2036 = shalt.err (!%p2033_p7)
}
  0x10   :  { %s2064_s11 = smov 256   ;;  %s2065_s12 = smov 16  }
  0x11   :  { %31 = dma.hbm_to_vmem [thread:$0]  %s2929_s3, 4096, %s26_s25, [#allocation3], %s2064_s11, %s2064_s11, %s2065_s12  }
  0x12   :  { %s2066_s15 = smov [#allocation4]   ;;  %s2037_s19 = scalar_lea.hbm %s2931_s5, 4096 }
  0x13   :  { %s39_s16 = sshll.u32 %s2066_s15, 4  ;;  %p2038_p8 = scmp.ne.s32.totalorder %s2931_s5, %s2037_s19  ;;  %s40_s16 = int_to_ptr.vmem [resolvable:$true] %s39_s16 }
  0x14   :  { %p2041_p9 = scmp.lt.u32.totalorder %s2037_s19, %s2931_s5 }
  0x16   :  { %p2043_p10 = pnand %p2041_p9, %p2038_p8 }
  0x18   :  { %2046 = shalt.err (!%p2043_p10)
}
  0x19   :  { %s2047_s24 = scalar_lea.vmem %s40_s16, 4096  ;;  %p2052_p12 = scmp.lt.s32.totalorder %s40_s16, %s40_s16 }
  0x1a   :  { %p2048_p11 = scmp.ne.s32.totalorder %s40_s16, %s2047_s24  ;;  %p2053_p13 = scmp.lt.s32.totalorder %s2047_s24, %s2047_s24 }
  0x1c   :  { %p2054_p0 = por %p2053_p13, %p2052_p12 }
  0x1e   :  { %p2055_p1 = pnand %p2054_p0, %p2048_p11 }
  0x20   :  { %2058 = shalt.err (!%p2055_p1)
}
  0x21   :  { %s2067_s3 = smov 64   ;;  %s2068_s25 = smov 4  }
  0x22   :  { %45 = dma.hbm_to_vmem [thread:$0]  %s2931_s5, 4096, %s40_s16, [#allocation5], %s2067_s3, %s2067_s3, %s2068_s25  }
  0x23   :  { %2059 = dma.done.wait [#allocation3], 4096  }
  0x24   :  { %2060 = vsyncadd [#allocation3], 4294963200 }
  0x25   :  { %2061 = dma.done.wait [#allocation5], 4096  }
  0x26   :  { %2062 = vsyncadd [#allocation5], 4294963200  ;;  %v55_v0 = vld [vmem:[%s2926_s0] sm:$0xff]  ;;  %v57_v1 = vld [vmem:[%s2926_s0 + $0x10] sm:$0xff] }
  0x27   :  { %73 = vadd.xlane.f32.xlu0 %v55_v0  ;;  %77 = vadd.xlane.f32.xlu1 %v57_v1  ;;  %v56_v2 = vld [vmem:[%s2926_s0 + $0x8] sm:$0xff]  ;;  %v58_v3 = vld [vmem:[%s2926_s0 + $0x18] sm:$0xff]  ;;  %v59_v4 = vld [vmem:[%s2926_s0 + $0x20] sm:$0xff] }
  0x28   :  { %v60_v5 = vld [vmem:[%s2926_s0 + $0x28] sm:$0xff]  ;;  %v2155_v6 = vld [vmem:[%s2926_s0 + $0x30] sm:$0xff]  ;;  %v2160_v7 = vld [vmem:[%s2926_s0 + $0x38] sm:$0xff] }
  0x29   :  { %v2165_v8 = vld [vmem:[%s2926_s0 + $0x40] sm:$0xff]  ;;  %v2170_v9 = vld [vmem:[%s2926_s0 + $0x48] sm:$0xff]  ;;  %v2177_v10 = vld [vmem:[%s2926_s0 + $0x50] sm:$0xff] }
  0x2a   :  { %v2182_v11 = vld [vmem:[%s2926_s0 + $0x58] sm:$0xff]  ;;  %v2189_v12 = vld [vmem:[%s2926_s0 + $0x60] sm:$0xff]  ;;  %v2194_v13 = vld [vmem:[%s2926_s0 + $0x68] sm:$0xff] }
  0x2b   :  { %75 = vadd.xlane.f32.xlu0 %v56_v2  ;;  %79 = vadd.xlane.f32.xlu1 %v58_v3  ;;  %v2201_v14 = vld [vmem:[%s2926_s0 + $0x70] sm:$0xff]  ;;  %v2206_v15 = vld [vmem:[%s2926_s0 + $0x78] sm:$0xff] }
  0x2c   :  { %v1775_v16 = vld [vmem:[#allocation2 + $0x4] ss:$16 sps:$4 sm:$0xff]   ;;  %v1777_v17 = vld [vmem:[#allocation2 + $0xc] ss:$16 sps:$4 sm:$0xff]   ;;  %v1779_v18 = vld [vmem:[#allocation2] ss:$16 sps:$4 sm:$0xff]  }
  0x2d   :  { %v1780_v19 = vld [vmem:[#allocation2 + $0x8] ss:$16 sps:$4 sm:$0xff]   ;;  %v1781_v20 = vld [vmem:[#allocation2 + $0x24] ss:$16 sps:$4 sm:$0xff]   ;;  %v1783_v21 = vld [vmem:[#allocation2 + $0x2c] ss:$16 sps:$4 sm:$0xff]   ;;  %516 = vmatprep.subr.bf16.mxu0 %v1775_v16  ;;  %629 = vmatprep.subr.bf16.mxu1 %v1777_v17 }
  0x2e   :  { %517 = vmatpush1.bf16.msra.mxu0 %v1779_v18  ;;  %630 = vmatpush1.bf16.msra.mxu1 %v1780_v19  ;;  %v1785_v60 = vld [vmem:[#allocation2 + $0x20] ss:$16 sps:$4 sm:$0xff]   ;;  %v1786_v61 = vld [vmem:[#allocation2 + $0x28] ss:$16 sps:$4 sm:$0xff]  }
  0x2f   :  { %81 = vadd.xlane.f32.xlu0 %v59_v4  ;;  %83 = vadd.xlane.f32.xlu1 %v60_v5  ;;  %v1791_v16 = vld [vmem:[#allocation2 + $0x40] ss:$16 sps:$4 sm:$0xff]   ;;  %v1792_v17 = vld [vmem:[#allocation2 + $0x48] ss:$16 sps:$4 sm:$0xff]  }
  0x30   :  { %518 = vmatprep.subr.bf16.mxu0 %v1781_v20  ;;  %631 = vmatprep.subr.bf16.mxu1 %v1783_v21 }
  0x32   :  { %519 = vmatpush1.bf16.msra.mxu0 %v1785_v60  ;;  %632 = vmatpush1.bf16.msra.mxu1 %v1786_v61  ;;  %v1825_v60 = vld [vmem:[#allocation4 + $0xc0] sm:$0xff]  }
  0x33   :  { %85 = vadd.xlane.f32.xlu0 %v2155_v6  ;;  %87 = vadd.xlane.f32.xlu1 %v2160_v7 }
  0x37   :  { %89 = vadd.xlane.f32.xlu0 %v2165_v8  ;;  %91 = vadd.xlane.f32.xlu1 %v2170_v9 }
  0x3b   :  { %93 = vadd.xlane.f32.xlu0 %v2177_v10  ;;  %95 = vadd.xlane.f32.xlu1 %v2182_v11 }
  0x3f   :  { %97 = vadd.xlane.f32.xlu0 %v2189_v12  ;;  %99 = vadd.xlane.f32.xlu1 %v2194_v13 }
  0x43   :  { %101 = vadd.xlane.f32.xlu0 %v2201_v14  ;;  %103 = vadd.xlane.f32.xlu1 %v2206_v15 }
  0xb4   :  { %v74_v22 = vpop.xlane.xlu0 %73  ;;  %v78_v23 = vpop.xlane.xlu1 %77 }
  0xb5   :  { %v106_v24 = vmul.f32 0.0078125, %v74_v22  ;;  %v108_v25 = vmul.f32 0.0078125, %v78_v23  ;;  %v1793_v22 = vld [vmem:[#allocation2 + $0x64] ss:$16 sps:$4 sm:$0xff]   ;;  %v1795_v23 = vld [vmem:[#allocation2 + $0x6c] ss:$16 sps:$4 sm:$0xff]  }
  0xb7   :  { %v2212_v26 = vsub.f32 %v55_v0, %v106_v24  ;;  %v2214_v27 = vsub.f32 %v57_v1, %v108_v25 }
  0xb8   :  { %v76_v28 = vpop.xlane.xlu0 %75  ;;  %v80_v29 = vpop.xlane.xlu1 %79 }
  0xb9   :  { %v107_v30 = vmul.f32 0.0078125, %v76_v28  ;;  %v138_v31 = vmul.f32 %v2212_v26, %v2212_v26  ;;  %v109_v32 = vmul.f32 0.0078125, %v80_v29  ;;  %v140_v35 = vmul.f32 %v2214_v27, %v2214_v27  ;;  %v1797_v28 = vld [vmem:[#allocation2 + $0x60] ss:$16 sps:$4 sm:$0xff]   ;;  %v1798_v29 = vld [vmem:[#allocation2 + $0x68] ss:$16 sps:$4 sm:$0xff]  }
  0xbb   :  { %v2218_v33 = vsub.f32 %v56_v2, %v107_v30  ;;  %154 = vadd.xlane.f32.xlu0 %v138_v31  ;;  %v2220_v34 = vsub.f32 %v58_v3, %v109_v32  ;;  %v1787_v3 = vld [vmem:[#allocation2 + $0x44] ss:$16 sps:$4 sm:$0xff]  }
  0xbc   :  { %v82_v36 = vpop.xlane.xlu0 %81  ;;  %v84_v37 = vpop.xlane.xlu1 %83  ;;  %520 = vmatprep.subr.bf16.mxu0 %v1787_v3 }
  0xbd   :  { %v110_v38 = vmul.f32 0.0078125, %v82_v36  ;;  %v139_v39 = vmul.f32 %v2218_v33, %v2218_v33  ;;  %v111_v40 = vmul.f32 0.0078125, %v84_v37  ;;  %v141_v43 = vmul.f32 %v2220_v34, %v2220_v34  ;;  %521 = vmatpush1.bf16.msra.mxu0 %v1791_v16  ;;  %v1799_v36 = vld [vmem:[#allocation2 + $0x84] ss:$16 sps:$4 sm:$0xff]   ;;  %v1801_v37 = vld [vmem:[#allocation2 + $0x8c] ss:$16 sps:$4 sm:$0xff]  }
  0xbe   :  { %522 = vmatprep.subr.bf16.mxu0 %v1793_v22 }
  0xbf   :  { %v2226_v41 = vsub.f32 %v59_v4, %v110_v38  ;;  %158 = vadd.xlane.f32.xlu0 %v140_v35  ;;  %156 = vadd.xlane.f32.xlu1 %v139_v39  ;;  %v2228_v42 = vsub.f32 %v60_v5, %v111_v40  ;;  %v1789_v4 = vld [vmem:[#allocation2 + $0x4c] ss:$16 sps:$4 sm:$0xff]   ;;  %v1803_v38 = vld [vmem:[#allocation2 + $0x80] ss:$16 sps:$4 sm:$0xff]   ;;  %v1804_v39 = vld [vmem:[#allocation2 + $0x88] ss:$16 sps:$4 sm:$0xff]  }
  0xc0   :  { %v86_v44 = vpop.xlane.xlu0 %85  ;;  %v88_v45 = vpop.xlane.xlu1 %87  ;;  %633 = vmatprep.subr.bf16.mxu1 %v1789_v4 }
  0xc1   :  { %v112_v46 = vmul.f32 0.0078125, %v86_v44  ;;  %v142_v47 = vmul.f32 %v2226_v41, %v2226_v41  ;;  %v113_v48 = vmul.f32 0.0078125, %v88_v45  ;;  %v143_v51 = vmul.f32 %v2228_v42, %v2228_v42  ;;  %634 = vmatpush1.bf16.msra.mxu1 %v1792_v17  ;;  %523 = vmatpush1.bf16.msra.mxu0 %v1797_v28  ;;  %v1809_v44 = vld [vmem:[#allocation2 + $0xa0] ss:$16 sps:$4 sm:$0xff]   ;;  %v1810_v45 = vld [vmem:[#allocation2 + $0xa8] ss:$16 sps:$4 sm:$0xff]  }
  0xc2   :  { %635 = vmatprep.subr.bf16.mxu1 %v1795_v23  ;;  %524 = vmatprep.subr.bf16.mxu0 %v1799_v36 }
  0xc3   :  { %v2235_v49 = vsub.f32 %v2155_v6, %v112_v46  ;;  %160 = vadd.xlane.f32.xlu1 %v141_v43  ;;  %162 = vadd.xlane.f32.xlu0 %v142_v47  ;;  %v2238_v50 = vsub.f32 %v2160_v7, %v113_v48  ;;  %v1807_v43 = vld [vmem:[#allocation2 + $0xac] ss:$16 sps:$4 sm:$0xff]   ;;  %v1811_v46 = vld [vmem:[#allocation2 + $0xc4] ss:$16 sps:$4 sm:$0xff]   ;;  %v1815_v48 = vld [vmem:[#allocation2 + $0xc0] ss:$16 sps:$4 sm:$0xff]  }
  0xc4   :  { %v90_v52 = vpop.xlane.xlu0 %89  ;;  %v92_v53 = vpop.xlane.xlu1 %91  ;;  %v1813_v47 = vld [vmem:[#allocation2 + $0xcc] ss:$16 sps:$4 sm:$0xff]  }
  0xc5   :  { %v114_v54 = vmul.f32 0.0078125, %v90_v52  ;;  %v144_v55 = vmul.f32 %v2235_v49, %v2235_v49  ;;  %v115_v56 = vmul.f32 0.0078125, %v92_v53  ;;  %v145_v59 = vmul.f32 %v2238_v50, %v2238_v50  ;;  %636 = vmatpush1.bf16.msra.mxu1 %v1798_v29  ;;  %525 = vmatpush1.bf16.msra.mxu0 %v1803_v38  ;;  %v1817_v52 = vld [vmem:[#allocation2 + $0xe4] ss:$16 sps:$4 sm:$0xff]   ;;  %v1819_v53 = vld [vmem:[#allocation2 + $0xec] ss:$16 sps:$4 sm:$0xff]  }
  0xc6   :  { %637 = vmatprep.subr.bf16.mxu1 %v1801_v37 }
  0xc7   :  { %v2245_v57 = vsub.f32 %v2165_v8, %v114_v54  ;;  %164 = vadd.xlane.f32.xlu1 %v143_v51  ;;  %166 = vadd.xlane.f32.xlu0 %v144_v55  ;;  %v2248_v58 = vsub.f32 %v2170_v9, %v115_v56  ;;  %v1816_v51 = vld [vmem:[#allocation2 + $0xc8] ss:$16 sps:$4 sm:$0xff]   ;;  %v1821_v54 = vld [vmem:[#allocation2 + $0xe0] ss:$16 sps:$4 sm:$0xff]   ;;  %v2069_v56 = vmov 0  }
  0xc8   :  { %v94_v62 = vpop.xlane.xlu0 %93  ;;  %v96_v63 = vpop.xlane.xlu1 %95  ;;  %v1822_v55 = vld [vmem:[#allocation2 + $0xe8] ss:$16 sps:$4 sm:$0xff]   ;;  %548 = vmatprep.mubr.bf16.mxu0 %v2069_v56  ;;  %661 = vmatprep.mubr.bf16.mxu1 %v2069_v56 }
  0xc9   :  { %v116_v0 = vmul.f32 0.0078125, %v94_v62  ;;  %v146_v1 = vmul.f32 %v2245_v57, %v2245_v57  ;;  %v117_v2 = vmul.f32 0.0078125, %v96_v63  ;;  %v147_v7 = vmul.f32 %v2248_v58, %v2248_v58  ;;  %638 = vmatpush1.bf16.msra.mxu1 %v1804_v39 }
  0xca   :  { %639 = vmatprep.subr.bf16.mxu1 %v1807_v43 }
  0xcb   :  { %v2255_v5 = vsub.f32 %v2177_v10, %v116_v0  ;;  %168 = vadd.xlane.f32.xlu1 %v145_v59  ;;  %170 = vadd.xlane.f32.xlu0 %v146_v1  ;;  %v2258_v6 = vsub.f32 %v2182_v11, %v117_v2  ;;  %v1823_v59 = vld [vmem:[#allocation4 + $0x40] sm:$0xff]  }
  0xcc   :  { %v98_v8 = vpop.xlane.xlu0 %97  ;;  %v100_v9 = vpop.xlane.xlu1 %99 }
  0xcd   :  { %v118_v18 = vmul.f32 0.0078125, %v98_v8  ;;  %v148_v19 = vmul.f32 %v2255_v5, %v2255_v5  ;;  %v119_v10 = vmul.f32 0.0078125, %v100_v9  ;;  %v149_v21 = vmul.f32 %v2258_v6, %v2258_v6  ;;  %640 = vmatpush1.bf16.msra.mxu1 %v1810_v45 }
  0xce   :  { %641 = vmatprep.subr.bf16.mxu1 %v1813_v47 }
  0xcf   :  { %v2265_v20 = vsub.f32 %v2189_v12, %v118_v18  ;;  %172 = vadd.xlane.f32.xlu1 %v147_v7  ;;  %174 = vadd.xlane.f32.xlu0 %v148_v19  ;;  %v2268_v11 = vsub.f32 %v2194_v13, %v119_v10 }
  0xd0   :  { %v102_v24 = vpop.xlane.xlu0 %101  ;;  %v104_v25 = vpop.xlane.xlu1 %103 }
  0xd1   :  { %v120_v30 = vmul.f32 0.0078125, %v102_v24  ;;  %v150_v31 = vmul.f32 %v2265_v20, %v2265_v20  ;;  %v121_v12 = vmul.f32 0.0078125, %v104_v25  ;;  %v151_v35 = vmul.f32 %v2268_v11, %v2268_v11  ;;  %642 = vmatpush1.bf16.msra.mxu1 %v1816_v51 }
  0xd2   :  { %643 = vmatprep.subr.bf16.mxu1 %v1819_v53  ;;  %v1826_v53 = vld [vmem:[#allocation4 + $0x80] sm:$0xff]  }
  0xd3   :  { %v2275_v13 = vsub.f32 %v2201_v14, %v120_v30  ;;  %176 = vadd.xlane.f32.xlu1 %v149_v21  ;;  %178 = vadd.xlane.f32.xlu0 %v150_v31  ;;  %v2278_v32 = vsub.f32 %v2206_v15, %v121_v12  ;;  %v1805_v15 = vld [vmem:[#allocation2 + $0xa4] ss:$16 sps:$4 sm:$0xff]   ;;  %v2292_v30 = vld [vmem:[%s2927_s1] ss:$0 sm:$0xff] }
  0xd4   :  { %526 = vmatprep.subr.bf16.mxu0 %v1805_v15 }
  0xd5   :  { %v152_v40 = vmul.f32 %v2275_v13, %v2275_v13  ;;  %v153_v14 = vmul.f32 %v2278_v32, %v2278_v32  ;;  %527 = vmatpush1.bf16.msra.mxu0 %v1809_v44  ;;  %644 = vmatpush1.bf16.msra.mxu1 %v1822_v55 }
  0xd6   :  { %528 = vmatprep.subr.bf16.mxu0 %v1811_v46  ;;  %1704 = vmatprep.subr.bf16.mxu1 %v1825_v60  ;;  %v1829_v60 = vld [vmem:[#allocation4 + $0xc8] sm:$0xff]  }
  0xd7   :  { %180 = vadd.xlane.f32.xlu1 %v151_v35  ;;  %182 = vadd.xlane.f32.xlu0 %v152_v40 }
  0xd9   :  { %529 = vmatpush1.bf16.msra.mxu0 %v1815_v48 }
  0xda   :  { %530 = vmatprep.subr.bf16.mxu0 %v1817_v52  ;;  %v1824_v52 = vld [vmem:[#allocation4] sm:$0xff]  }
  0xdb   :  { %184 = vadd.xlane.f32.xlu1 %v153_v14 }
  0xdd   :  { %531 = vmatpush1.bf16.msra.mxu0 %v1821_v54 }
  0xde   :  { %1640 = vmatprep.subr.bf16.mxu0 %v1823_v59  ;;  %v1827_v59 = vld [vmem:[#allocation4 + $0x48] sm:$0xff]  }
 0x148   :  { %v155_v61 = vpop.xlane.xlu0 %154 }
 0x149   :  { %v186_v62 = vmul.f32 0.0078125, %v155_v61 }
 0x14b   :  { %v202_v63 = vadd.f32 1e-05, %v186_v62 }
 0x14c   :  { %v157_v0 = vpop.xlane.xlu1 %156  ;;  %v159_v1 = vpop.xlane.xlu0 %158 }
 0x14d   :  { %1855 = vrsqrt.f32 %v202_v63  ;;  %v187_v2 = vmul.f32 0.0078125, %v157_v0  ;;  %v188_v3 = vmul.f32 0.0078125, %v159_v1  ;;  %v1828_v1 = vld [vmem:[#allocation4 + $0x8] sm:$0xff]  }
 0x14f   :  { %v203_v4 = vadd.f32 1e-05, %v187_v2  ;;  %v204_v7 = vadd.f32 1e-05, %v188_v3  ;;  %v1830_v2 = vld [vmem:[#allocation4 + $0x88] sm:$0xff]  }
 0x150   :  { %v161_v8 = vpop.xlane.xlu1 %160  ;;  %v163_v9 = vpop.xlane.xlu0 %162 }
 0x151   :  { %1857 = vrsqrt.f32 %v203_v4  ;;  %v189_v16 = vmul.f32 0.0078125, %v161_v8  ;;  %v190_v18 = vmul.f32 0.0078125, %v163_v9  ;;  %v1831_v4 = vld [vmem:[#allocation4 + $0x50] sm:$0xff]  }
 0x152   :  { %1859 = vrsqrt.f32 %v204_v7  ;;  %v1833_v7 = vld [vmem:[#allocation4 + $0xd0] sm:$0xff]  }
 0x153   :  { %v205_v17 = vadd.f32 1e-05, %v189_v16  ;;  %v206_v22 = vadd.f32 1e-05, %v190_v18 }
 0x154   :  { %v165_v19 = vpop.xlane.xlu1 %164  ;;  %v167_v24 = vpop.xlane.xlu0 %166 }
 0x155   :  { %1861 = vrsqrt.f32 %v205_v17  ;;  %v191_v10 = vmul.f32 0.0078125, %v165_v19  ;;  %v192_v12 = vmul.f32 0.0078125, %v167_v24  ;;  %v1837_v24 = vld [vmem:[#allocation4 + $0xd8] sm:$0xff]  }
 0x157   :  { %v1856_v21 = vpop.eup %1855  ;;  %v207_v23 = vadd.f32 1e-05, %v191_v10  ;;  %v208_v15 = vadd.f32 1e-05, %v192_v12  ;;  %v1834_v10 = vld [vmem:[#allocation4 + $0x90] sm:$0xff]  }
 0x158   :  { %v169_v25 = vpop.xlane.xlu1 %168  ;;  %v234_v28 = vmul.f32 %v1856_v21, %v2212_v26  ;;  %v2299_v26 = vld [vmem:[%s2928_s2] ss:$0 sm:$0xff]  ;;  %v171_v43 = vpop.xlane.xlu0 %170 }
 0x159   :  { %1863 = vrsqrt.f32 %v207_v23  ;;  %v193_v29 = vmul.f32 0.0078125, %v169_v25  ;;  %v194_v55 = vmul.f32 0.0078125, %v171_v43  ;;  %v1835_v23 = vld [vmem:[#allocation4 + $0x58] sm:$0xff]  }
 0x15a   :  { %1865 = vrsqrt.f32 %v206_v22  ;;  %v256_v36 = vmul.f32 %v2292_v30, %v234_v28 }
 0x15b   :  { %v1858_v31 = vpop.eup %1857  ;;  %v209_v38 = vadd.f32 1e-05, %v193_v29  ;;  %v210_v3 = vadd.f32 1e-05, %v194_v55 }
 0x15c   :  { %v235_v35 = vmul.f32 %v1858_v31, %v2218_v33  ;;  %v1860_v37 = vpop.eup %1859  ;;  %v173_v39 = vpop.xlane.xlu1 %172  ;;  %v278_v44 = vadd.f32 %v2299_v26, %v256_v36  ;;  %v1838_v36 = vld [vmem:[#allocation4 + $0x98] sm:$0xff]  }
 0x15d   :  { %v236_v33 = vmul.f32 %v1860_v37, %v2214_v27  ;;  %1867 = vrsqrt.f32 %v209_v38  ;;  %v195_v47 = vmul.f32 0.0078125, %v173_v39  ;;  %v175_v8 = vpop.xlane.xlu0 %174  ;;  %v1839_v38 = vld [vmem:[#allocation4 + $0x60] sm:$0xff]  }
 0x15e   :  { %v257_v40 = vmul.f32 %v2292_v30, %v235_v35  ;;  %1869 = vrsqrt.f32 %v208_v15  ;;  %v196_v22 = vmul.f32 0.0078125, %v175_v8  ;;  %v1836_v35 = vld [vmem:[#allocation4 + $0x18] sm:$0xff]   ;;  %v1841_v39 = vld [vmem:[#allocation4 + $0xe0] sm:$0xff]  }
 0x15f   :  { %v1862_v14 = vpop.eup %1861  ;;  %v258_v61 = vmul.f32 %v2292_v30, %v236_v33  ;;  %v211_v27 = vadd.f32 1e-05, %v195_v47  ;;  %v1842_v33 = vld [vmem:[#allocation4 + $0xa0] sm:$0xff]  }
 0x160   :  { %v279_v45 = vadd.f32 %v2299_v26, %v257_v40  ;;  %v237_v46 = vmul.f32 %v1862_v14, %v2220_v34  ;;  %v177_v34 = vpop.xlane.xlu1 %176  ;;  %v212_v37 = vadd.f32 1e-05, %v196_v22 }
 0x161   :  { %v280_v9 = vadd.f32 %v2299_v26, %v258_v61  ;;  %1871 = vrsqrt.f32 %v211_v27  ;;  %v197_v17 = vmul.f32 0.0078125, %v177_v34  ;;  %v179_v40 = vpop.xlane.xlu0 %178 }
 0x162   :  { %v294_v48 = vpack.c.bf16 %v279_v45, %v278_v44  ;;  %v259_v51 = vmul.f32 %v2292_v30, %v237_v46  ;;  %1873 = vrsqrt.f32 %v210_v3  ;;  %v198_v47 = vmul.f32 0.0078125, %v179_v40  ;;  %v1848_v40 = vld [vmem:[#allocation4 + $0x30] sm:$0xff]  }
 0x163   :  { %v1864_v54 = vpop.eup %1863  ;;  %v213_v28 = vadd.f32 1e-05, %v197_v17 }
 0x164   :  { %549 = vmatmul.mubr.bf16.vlgmr.msra.gmra.mrb[0].mxu0 %v294_v48  ;;  %662 = vmatmul.mubr.bf16.vlgmr.msra.gmra.mrb[0].mxu1 %v294_v48  ;;  %v1866_v62 = vpop.eup %1865  ;;  %v281_v63 = vadd.f32 %v2299_v26, %v259_v51  ;;  %v239_v0 = vmul.f32 %v1864_v54, %v2228_v42  ;;  %v1832_v42 = vld [vmem:[#allocation4 + $0x10] sm:$0xff]   ;;  %v181_v29 = vpop.xlane.xlu1 %180  ;;  %v214_v55 = vadd.f32 1e-05, %v198_v47  ;;  %v334_v47 = vld [vmem:[%s2930_s4] sm:$0xf] }
 0x165   :  { %558 = vmatprep.mubr.bf16.mxu0 %v2069_v56  ;;  %671 = vmatprep.mubr.bf16.mxu1 %v2069_v56  ;;  %v238_v16 = vmul.f32 %v1866_v62, %v2226_v41  ;;  %1875 = vrsqrt.f32 %v213_v28  ;;  %v199_v43 = vmul.f32 0.0078125, %v181_v29 }
 0x166   :  { %1641 = vmatpush3.bf16.msra.mxu0 %v1824_v52  ;;  %1705 = vmatpush3.bf16.msra.mxu1 %v1826_v53  ;;  %v295_v18 = vpack.c.bf16 %v281_v63, %v280_v9  ;;  %v261_v19 = vmul.f32 %v2292_v30, %v239_v0  ;;  %1877 = vrsqrt.f32 %v212_v37  ;;  %v1843_v37 = vld [vmem:[#allocation4 + $0x68] sm:$0xff]  }
 0x167   :  { %1642 = vmatprep.subr.bf16.mxu0 %v1827_v59  ;;  %1706 = vmatprep.subr.bf16.mxu1 %v1829_v60  ;;  %v1868_v21 = vpop.eup %1867  ;;  %v260_v41 = vmul.f32 %v2292_v30, %v238_v16  ;;  %v183_v59 = vpop.xlane.xlu0 %182 }
 0x168   :  { %v1870_v25 = vpop.eup %1869  ;;  %v283_v31 = vadd.f32 %v2299_v26, %v261_v19  ;;  %v241_v12 = vmul.f32 %v1868_v21, %v2238_v50  ;;  %v1840_v50 = vld [vmem:[#allocation4 + $0x20] sm:$0xff]   ;;  %v185_v52 = vpop.xlane.xlu1 %184  ;;  %v200_v0 = vmul.f32 0.0078125, %v183_v59 }
 0x169   :  { %v282_v14 = vadd.f32 %v2299_v26, %v260_v41  ;;  %v240_v15 = vmul.f32 %v1870_v25, %v2235_v49  ;;  %v215_v49 = vadd.f32 1e-05, %v199_v43  ;;  %v201_v62 = vmul.f32 0.0078125, %v185_v52  ;;  %v1853_v43 = vld [vmem:[#allocation4 + $0xf8] sm:$0xff]  }
 0x16a   :  { %1643 = vmatpush3.bf16.msra.mxu0 %v1828_v1  ;;  %1707 = vmatpush3.bf16.msra.mxu1 %v1830_v2  ;;  %v263_v45 = vmul.f32 %v2292_v30, %v241_v12 }
 0x16b   :  { %1644 = vmatprep.subr.bf16.mxu0 %v1831_v4  ;;  %1708 = vmatprep.subr.bf16.mxu1 %v1833_v7  ;;  %v296_v44 = vpack.c.bf16 %v283_v31, %v282_v14  ;;  %v1872_v46 = vpop.eup %1871  ;;  %v262_v48 = vmul.f32 %v2292_v30, %v240_v15  ;;  %1879 = vrsqrt.f32 %v215_v49  ;;  %v217_v2 = vadd.f32 1e-05, %v201_v62  ;;  %v1849_v14 = vld [vmem:[#allocation4 + $0xf0] sm:$0xff]   ;;  %v1852_v15 = vld [vmem:[#allocation4 + $0x38] sm:$0xff]  }
 0x16c   :  { %559 = vmatmul.mubr.bf16.gmra.mrb[4].mxu0 %v295_v18  ;;  %672 = vmatmul.mubr.bf16.gmra.mrb[4].mxu1 %v295_v18  ;;  %v1874_v51 = vpop.eup %1873  ;;  %v285_v53 = vadd.f32 %v2299_v26, %v263_v45  ;;  %v243_v54 = vmul.f32 %v1872_v46, %v2248_v58  ;;  %1881 = vrsqrt.f32 %v214_v55  ;;  %v216_v4 = vadd.f32 1e-05, %v200_v0 }
 0x16d   :  { %568 = vmatprep.mubr.bf16.mxu0 %v2069_v56  ;;  %681 = vmatprep.mubr.bf16.mxu1 %v2069_v56  ;;  %v284_v60 = vadd.f32 %v2299_v26, %v262_v48  ;;  %v242_v61 = vmul.f32 %v1874_v51, %v2245_v57  ;;  %1883 = vrsqrt.f32 %v217_v2  ;;  %v336_v45 = vlaneseq }
 0x16e   :  { %1645 = vmatpush3.bf16.msra.mxu0 %v1832_v42  ;;  %1709 = vmatpush3.bf16.msra.mxu1 %v1834_v10  ;;  %v265_v34 = vmul.f32 %v2292_v30, %v243_v54  ;;  %1885 = vrsqrt.f32 %v216_v4 }
 0x16f   :  { %1646 = vmatprep.subr.bf16.mxu0 %v1835_v23  ;;  %1710 = vmatprep.subr.bf16.mxu1 %v1837_v24  ;;  %v297_v27 = vpack.c.bf16 %v285_v53, %v284_v60  ;;  %v1876_v63 = vpop.eup %1875  ;;  %v264_v58 = vmul.f32 %v2292_v30, %v242_v61 }
 0x170   :  { %v1878_v1 = vpop.eup %1877  ;;  %v287_v57 = vadd.f32 %v2299_v26, %v265_v34  ;;  %v245_v3 = vmul.f32 %v1876_v63, %v2258_v6 }
 0x171   :  { %v286_v7 = vadd.f32 %v2299_v26, %v264_v58  ;;  %v244_v8 = vmul.f32 %v1878_v1, %v2255_v5 }
 0x172   :  { %1647 = vmatpush3.bf16.msra.mxu0 %v1836_v35  ;;  %1711 = vmatpush3.bf16.msra.mxu1 %v1838_v36  ;;  %v267_v16 = vmul.f32 %v2292_v30, %v245_v3 }
 0x173   :  { %1648 = vmatprep.subr.bf16.mxu0 %v1839_v38  ;;  %1712 = vmatprep.subr.bf16.mxu1 %v1841_v39  ;;  %v298_v9 = vpack.c.bf16 %v287_v57, %v286_v7  ;;  %v266_v18 = vmul.f32 %v2292_v30, %v244_v8  ;;  %v1845_v38 = vld [vmem:[#allocation4 + $0xe8] sm:$0xff]  }
 0x174   :  { %569 = vmatmul.mubr.bf16.gmra.mrb[8].mxu0 %v296_v44  ;;  %682 = vmatmul.mubr.bf16.gmra.mrb[8].mxu1 %v296_v44  ;;  %v289_v6 = vadd.f32 %v2299_v26, %v267_v16  ;;  %v1846_v39 = vld [vmem:[#allocation4 + $0xa8] sm:$0xff]   ;;  %v1854_v44 = vld [vmem:[#allocation4 + $0xb8] sm:$0xff]  }
 0x175   :  { %578 = vmatprep.mubr.bf16.mxu0 %v2069_v56  ;;  %691 = vmatprep.mubr.bf16.mxu1 %v2069_v56  ;;  %v1880_v17 = vpop.eup %1879  ;;  %v288_v5 = vadd.f32 %v2299_v26, %v266_v18 }
 0x176   :  { %1649 = vmatpush3.bf16.msra.mxu0 %v1840_v50  ;;  %1713 = vmatpush3.bf16.msra.mxu1 %v1842_v33  ;;  %v1882_v19 = vpop.eup %1881  ;;  %v247_v42 = vmul.f32 %v1880_v17, %v2268_v11  ;;  %v337_v50 = vshrl.u32 %v336_v45, 7 }
 0x177   :  { %v246_v10 = vmul.f32 %v1882_v19, %v2265_v20  ;;  %v299_v21 = vpack.c.bf16 %v289_v6, %v288_v5  ;;  %v1884_v23 = vpop.eup %1883  ;;  %1650 = vmatprep.subr.bf16.mxu0 %v1843_v37  ;;  %1714 = vmatprep.subr.bf16.mxu1 %v1845_v38 }
 0x178   :  { %v269_v22 = vmul.f32 %v2292_v30, %v247_v42  ;;  %v1886_v41 = vpop.eup %1885  ;;  %v249_v11 = vmul.f32 %v1884_v23, %v2278_v32  ;;  %v338_v33 = vsub.s32 0, %v337_v50  ;;  %v346_v46 = vsub.s32 2, %v337_v50 }
 0x179   :  { %v268_v24 = vmul.f32 %v2292_v30, %v246_v10  ;;  %v248_v20 = vmul.f32 %v1886_v41, %v2275_v13  ;;  %v1844_v13 = vld [vmem:[#allocation4 + $0x28] sm:$0xff]   ;;  %v342_v48 = vsub.s32 1, %v337_v50  ;;  %v350_v51 = vsub.s32 3, %v337_v50 }
 0x17a   :  { %v291_v25 = vadd.f32 %v2299_v26, %v269_v22  ;;  %v271_v31 = vmul.f32 %v2292_v30, %v249_v11  ;;  %1651 = vmatpush3.bf16.msra.mxu0 %v1844_v13  ;;  %1715 = vmatpush3.bf16.msra.mxu1 %v1846_v39  ;;  %v2363_v49 = vrot.slane %v334_v47, %v338_v33 }
 0x17b   :  { %v290_v28 = vadd.f32 %v2299_v26, %v268_v24  ;;  %v270_v12 = vmul.f32 %v2292_v30, %v248_v20  ;;  %v1847_v30 = vld [vmem:[#allocation4 + $0x70] sm:$0xff]   ;;  %1716 = vmatprep.subr.bf16.mxu1 %v1849_v14  ;;  %v2365_v52 = vrot.slane %v334_v47, %v346_v46  ;;  %v2367_v53 = vrot.slane %v334_v47, %v342_v48 }
 0x17c   :  { %579 = vmatmul.mubr.bf16.gmra.mrb[12].mxu0 %v297_v27  ;;  %692 = vmatmul.mubr.bf16.gmra.mrb[12].mxu1 %v297_v27  ;;  %v293_v35 = vadd.f32 %v2299_v26, %v271_v31  ;;  %v2369_v54 = vrot.slane %v334_v47, %v350_v51 }
 0x17d   :  { %588 = vmatprep.mubr.bf16.mxu0 %v2069_v56  ;;  %701 = vmatprep.mubr.bf16.mxu1 %v2069_v56  ;;  %v300_v29 = vpack.c.bf16 %v291_v25, %v290_v28  ;;  %v292_v36 = vadd.f32 %v2299_v26, %v270_v12  ;;  %v1851_v26 = vld [vmem:[#allocation4 + $0x78] sm:$0xff]  }
 0x17e   :  { %1652 = vmatprep.subr.bf16.mxu0 %v1847_v30 }
 0x17f   :  { %v301_v32 = vpack.c.bf16 %v293_v35, %v292_v36  ;;  %1653 = vmatpush3.bf16.msra.mxu0 %v1848_v40 }
 0x180   :  { %1654 = vmatprep.subr.bf16.mxu0 %v1851_v26 }
 0x183   :  { %1655 = vmatpush3.bf16.msra.mxu0 %v1852_v15 }
 0x184   :  { %589 = vmatmul.mubr.bf16.gmra.mrb[16].mxu0 %v298_v9  ;;  %702 = vmatmul.mubr.bf16.gmra.mrb[16].mxu1 %v298_v9 }
 0x185   :  { %598 = vmatprep.mubr.bf16.mxu0 %v2069_v56  ;;  %711 = vmatprep.mubr.bf16.mxu1 %v2069_v56 }
 0x18c   :  { %599 = vmatmul.mubr.bf16.gmra.mrb[20].mxu0 %v299_v21  ;;  %712 = vmatmul.mubr.bf16.gmra.mrb[20].mxu1 %v299_v21 }
 0x18d   :  { %608 = vmatprep.mubr.bf16.mxu0 %v2069_v56  ;;  %721 = vmatprep.mubr.bf16.mxu1 %v2069_v56 }
 0x194   :  { %609 = vmatmul.mubr.bf16.gmra.mrb[24].mxu0 %v300_v29  ;;  %722 = vmatmul.mubr.bf16.gmra.mrb[24].mxu1 %v300_v29 }
 0x195   :  { %618 = vmatprep.mubr.bf16.mxu0 %v2069_v56  ;;  %731 = vmatprep.mubr.bf16.mxu1 %v2069_v56  ;;  %v1850_v56 = vld [vmem:[#allocation4 + $0xb0] sm:$0xff]  }
 0x196   :  { %1717 = vmatpush3.bf16.msra.mxu1 %v1850_v56 }
 0x197   :  { %1718 = vmatprep.subr.bf16.mxu1 %v1853_v43 }
 0x19a   :  { %1719 = vmatpush3.bf16.msra.mxu1 %v1854_v44 }
 0x19c   :  { %619 = vmatmul.mubr.bf16.gmra.mrb[28].mxu0 %v301_v32  ;;  %732 = vmatmul.mubr.bf16.gmra.mrb[28].mxu1 %v301_v32 }
 0x237   :  { %v550_v55 = vpop.f32.mrb[0].mxu0  ;;  %v663_v59 = vpop.f32.mrb[0].mxu1 }
 0x238   :  { %v551_v60 = vadd.f32 %v550_v55, %v2363_v49  ;;  %v664_v61 = vadd.f32 %v663_v59, %v2365_v52  ;;  %v552_v62 = vpop.f32.mrb[1].mxu0  ;;  %v665_v27 = vpop.f32.mrb[1].mxu1 }
 0x239   :  { %v553_v34 = vadd.f32 %v552_v62, %v2367_v53  ;;  %v666_v63 = vadd.f32 %v665_v27, %v2369_v54  ;;  %v554_v0 = vpop.f32.mrb[2].mxu0  ;;  %v667_v58 = vpop.f32.mrb[2].mxu1 }
 0x23a   :  { %v806_v1 = vmul.f32 0.70710677, %v551_v60  ;;  %v808_v2 = vmul.f32 0.70710677, %v664_v61  ;;  %v555_v4 = vadd.f32 %v554_v0, %v2363_v49  ;;  %v668_v7 = vadd.f32 %v667_v58, %v2365_v52  ;;  %v556_v8 = vpop.f32.mrb[3].mxu0  ;;  %v669_v9 = vpop.f32.mrb[3].mxu1 }
 0x23b   :  { %v807_v57 = vmul.f32 0.70710677, %v553_v34  ;;  %v809_v3 = vmul.f32 0.70710677, %v666_v63  ;;  %v557_v16 = vadd.f32 %v556_v8, %v2367_v53  ;;  %v670_v17 = vadd.f32 %v669_v9, %v2369_v54 }
 0x23c   :  { %1887 = verf.f32 %v806_v1  ;;  %v810_v18 = vmul.f32 0.70710677, %v555_v4  ;;  %v812_v19 = vmul.f32 0.70710677, %v668_v7  ;;  %v742_v35 = vmul.f32 0.5, %v551_v60 }
 0x23d   :  { %1889 = verf.f32 %v808_v2  ;;  %v811_v6 = vmul.f32 0.70710677, %v557_v16  ;;  %v813_v5 = vmul.f32 0.70710677, %v670_v17  ;;  %v744_v30 = vmul.f32 0.5, %v664_v61 }
 0x23e   :  { %1891 = verf.f32 %v807_v57  ;;  %v743_v40 = vmul.f32 0.5, %v553_v34  ;;  %v2386_v14 = vmul.f32 0.5, %v666_v63  ;;  %v746_v56 = vmul.f32 0.5, %v555_v4 }
 0x23f   :  { %1893 = verf.f32 %v809_v3  ;;  %v560_v42 = vpop.f32.mrb[4].mxu0  ;;  %v673_v21 = vpop.f32.mrb[4].mxu1  ;;  %v748_v43 = vmul.f32 0.5, %v668_v7  ;;  %v2388_v46 = vmul.f32 0.5, %v557_v16  ;;  %v2390_v47 = vmul.f32 0.5, %v670_v17 }
 0x240   :  { %1895 = verf.f32 %v810_v18  ;;  %v561_v10 = vadd.f32 %v560_v42, %v2363_v49  ;;  %v562_v22 = vpop.f32.mrb[5].mxu0  ;;  %v674_v23 = vadd.f32 %v673_v21, %v2365_v52  ;;  %v675_v41 = vpop.f32.mrb[5].mxu1 }
 0x241   :  { %1897 = verf.f32 %v812_v19  ;;  %v563_v24 = vadd.f32 %v562_v22, %v2367_v53  ;;  %v564_v25 = vpop.f32.mrb[6].mxu0  ;;  %v676_v28 = vadd.f32 %v675_v41, %v2369_v54  ;;  %v677_v20 = vpop.f32.mrb[6].mxu1 }
 0x242   :  { %1899 = verf.f32 %v811_v6  ;;  %v814_v11 = vmul.f32 0.70710677, %v561_v10  ;;  %v566_v29 = vpop.f32.mrb[7].mxu0  ;;  %v816_v31 = vmul.f32 0.70710677, %v674_v23  ;;  %v679_v12 = vpop.f32.mrb[7].mxu1  ;;  %v565_v37 = vadd.f32 %v564_v25, %v2363_v49 }
 0x243   :  { %1901 = verf.f32 %v813_v5  ;;  %v815_v36 = vmul.f32 0.70710677, %v563_v24  ;;  %v817_v32 = vmul.f32 0.70710677, %v676_v28  ;;  %v678_v13 = vadd.f32 %v677_v20, %v2365_v52 }
 0x244   :  { %1903 = verf.f32 %v814_v11  ;;  %v567_v38 = vadd.f32 %v566_v29, %v2367_v53  ;;  %v818_v44 = vmul.f32 0.70710677, %v565_v37  ;;  %v680_v51 = vadd.f32 %v679_v12, %v2369_v54 }
 0x245   :  { %1905 = verf.f32 %v816_v31  ;;  %v820_v48 = vmul.f32 0.70710677, %v678_v13  ;;  %v2393_v61 = vmul.f32 0.5, %v561_v10  ;;  %v2395_v0 = vmul.f32 0.5, %v674_v23 }
 0x246   :  { %v1888_v39 = vpop.eup %1887  ;;  %1907 = verf.f32 %v815_v36  ;;  %v819_v62 = vmul.f32 0.70710677, %v567_v38  ;;  %v2397_v58 = vmul.f32 0.5, %v563_v24  ;;  %v2399_v1 = vmul.f32 0.5, %v676_v28 }
 0x247   :  { %v1890_v26 = vpop.eup %1889  ;;  %v934_v15 = vadd.f32 1.0, %v1888_v39  ;;  %v570_v45 = vpop.f32.mrb[8].mxu0  ;;  %1909 = verf.f32 %v817_v32  ;;  %v2405_v9 = vmul.f32 0.5, %v565_v37  ;;  %v821_v19 = vmul.f32 0.70710677, %v680_v51 }
 0x248   :  { %v683_v50 = vpop.f32.mrb[8].mxu1  ;;  %v1892_v33 = vpop.eup %1891  ;;  %v936_v60 = vadd.f32 1.0, %v1890_v26  ;;  %1911 = verf.f32 %v818_v44  ;;  %v571_v6 = vadd.f32 %v570_v45, %v2363_v49  ;;  %v2420_v20 = vmul.f32 0.5, %v678_v13 }
 0x249   :  { %v572_v55 = vpop.f32.mrb[9].mxu0  ;;  %v1894_v59 = vpop.eup %1893  ;;  %v2403_v4 = vmul.f32 %v934_v15, %v742_v35  ;;  %v935_v7 = vadd.f32 1.0, %v1892_v33  ;;  %1913 = verf.f32 %v820_v48  ;;  %v684_v21 = vadd.f32 %v683_v50, %v2365_v52 }
 0x24a   :  { %v685_v27 = vpop.f32.mrb[9].mxu1  ;;  %v574_v34 = vpop.f32.mrb[10].mxu0  ;;  %v2410_v5 = vmul.f32 %v936_v60, %v744_v30  ;;  %1915 = verf.f32 %v819_v62  ;;  %v937_v23 = vadd.f32 1.0, %v1894_v59  ;;  %v822_v41 = vmul.f32 0.70710677, %v571_v6 }
 0x24b   :  { %v1896_v63 = vpop.eup %1895  ;;  %v687_v2 = vpop.f32.mrb[10].mxu1  ;;  %v573_v25 = vadd.f32 %v572_v55, %v2367_v53  ;;  %v2422_v29 = vmul.f32 0.5, %v567_v38  ;;  %v2424_v31 = vmul.f32 0.5, %v680_v51  ;;  %v2428_v36 = vmul.f32 %v935_v7, %v743_v40 }
 0x24c   :  { %v2401_v57 = vpop.f32.mrb[11].mxu0  ;;  %v1898_v3 = vpop.eup %1897  ;;  %v938_v8 = vadd.f32 1.0, %v1896_v63  ;;  %1917 = verf.f32 %v821_v19  ;;  %v824_v26 = vmul.f32 0.70710677, %v684_v21  ;;  %v2441_v40 = vmul.f32 %v937_v23, %v2386_v14 }
 0x24d   :  { %v2407_v16 = vpop.f32.mrb[11].mxu1  ;;  %v1900_v17 = vpop.eup %1899  ;;  %v940_v18 = vadd.f32 1.0, %v1898_v3  ;;  %1919 = verf.f32 %v822_v41  ;;  %v823_v45 = vmul.f32 0.70710677, %v573_v25  ;;  %v686_v50 = vadd.f32 %v685_v27, %v2369_v54 }
 0x24e   :  { %v1902_v42 = vpop.eup %1901  ;;  %v2412_v10 = vmul.f32 %v938_v8, %v746_v56  ;;  %v939_v37 = vadd.f32 1.0, %v1900_v17  ;;  %v2448_v55 = vmul.f32 0.5, %v571_v6  ;;  %1921 = verf.f32 %v824_v26 }
 0x24f   :  { %v1904_v22 = vpop.eup %1903  ;;  %v2415_v24 = vmul.f32 %v940_v18, %v748_v43  ;;  %v580_v12 = vpop.f32.mrb[12].mxu0  ;;  %v941_v56 = vadd.f32 1.0, %v1902_v42  ;;  %v575_v59 = vadd.f32 %v574_v34, %v2363_v49  ;;  %v688_v60 = vadd.f32 %v687_v2, %v2365_v52 }
 0x250   :  { %v1906_v11 = vpop.eup %1905  ;;  %v1062_v28 = vpack.c.bf16 %v2412_v10, %v2403_v4  ;;  %v2426_v35 = vpop.f32.mrb[12].mxu1  ;;  %v942_v38 = vadd.f32 1.0, %v1904_v22  ;;  %v1003_v14 = vmul.f32 %v939_v37, %v2388_v46  ;;  %v2453_v3 = vmul.f32 0.5, %v684_v21 }
 0x251   :  { %v1064_v32 = vpack.c.bf16 %v2415_v24, %v2410_v5  ;;  %v2432_v39 = vpop.f32.mrb[13].mxu0  ;;  %v2434_v30 = vpop.f32.mrb[13].mxu1  ;;  %v944_v44 = vadd.f32 1.0, %v1906_v11  ;;  %1923 = verf.f32 %v823_v45  ;;  %v1005_v27 = vmul.f32 %v941_v56, %v2390_v47 }
 0x252   :  { %v1908_v13 = vpop.eup %1907  ;;  %v2436_v15 = vpop.f32.mrb[14].mxu0  ;;  %v2457_v7 = vmul.f32 %v942_v38, %v2393_v61  ;;  %v825_v8 = vmul.f32 0.70710677, %v686_v50  ;;  %v826_v17 = vmul.f32 0.70710677, %v575_v59  ;;  %v2462_v2 = vmul.f32 0.5, %v573_v25 }
 0x253   :  { %v2438_v43 = vpop.f32.mrb[14].mxu1  ;;  %v2444_v33 = vpop.f32.mrb[15].mxu0  ;;  %v943_v63 = vadd.f32 1.0, %v1908_v13  ;;  %v2460_v19 = vmul.f32 %v944_v44, %v2395_v0  ;;  %v828_v6 = vmul.f32 0.70710677, %v688_v60  ;;  %v577_v21 = vadd.f32 %v2401_v57, %v2367_v53 }
 0x254   :  { %v2446_v48 = vpop.f32.mrb[15].mxu1  ;;  %v1910_v51 = vpop.eup %1909  ;;  %1925 = verf.f32 %v825_v8  ;;  %v690_v47 = vadd.f32 %v2407_v16, %v2369_v54  ;;  %v2475_v23 = vmul.f32 0.5, %v686_v50  ;;  %v581_v41 = vadd.f32 %v580_v12, %v2363_v49 }
 0x255   :  { %v1912_v62 = vpop.eup %1911  ;;  %v945_v34 = vadd.f32 1.0, %v1910_v51  ;;  %v2473_v0 = vmul.f32 %v943_v63, %v2397_v58  ;;  %1927 = verf.f32 %v826_v17  ;;  %v2482_v37 = vmul.f32 0.5, %v575_v59 }
 0x256   :  { %v1914_v18 = vpop.eup %1913  ;;  %v946_v42 = vadd.f32 1.0, %v1912_v62  ;;  %1929 = verf.f32 %v828_v6  ;;  %v827_v16 = vmul.f32 0.70710677, %v577_v21  ;;  %v829_v44 = vmul.f32 0.70710677, %v690_v47 }
 0x257   :  { %v1916_v46 = vpop.eup %1915  ;;  %v2468_v61 = vpop.f32.mrb[16].mxu0  ;;  %v948_v57 = vadd.f32 1.0, %v1914_v18  ;;  %v2489_v38 = vmul.f32 %v945_v34, %v2399_v1  ;;  %v830_v12 = vmul.f32 0.70710677, %v581_v41  ;;  %v694_v59 = vadd.f32 %v2426_v35, %v2365_v52 }
 0x258   :  { %v2470_v22 = vpop.f32.mrb[16].mxu1  ;;  %v2478_v25 = vpop.f32.mrb[17].mxu0  ;;  %v947_v26 = vadd.f32 1.0, %v1916_v46  ;;  %v2494_v51 = vmul.f32 %v946_v42, %v2405_v9  ;;  %1931 = verf.f32 %v827_v16  ;;  %v583_v62 = vadd.f32 %v2432_v39, %v2367_v53 }
 0x259   :  { %v2480_v11 = vpop.f32.mrb[17].mxu1  ;;  %v2484_v13 = vpop.f32.mrb[18].mxu0  ;;  %1933 = verf.f32 %v829_v44  ;;  %v696_v1 = vadd.f32 %v2434_v30, %v2369_v54  ;;  %v1063_v8 = vpack.c.bf16 %v1003_v14, %v2428_v36  ;;  %v1065_v17 = vpack.c.bf16 %v1005_v27, %v2441_v40 }
 0x25a   :  { %v2486_v56 = vpop.f32.mrb[18].mxu1  ;;  %v1918_v58 = vpop.eup %1917  ;;  %v2507_v9 = vmul.f32 %v948_v57, %v2420_v20  ;;  %v2509_v6 = vmul.f32 0.5, %v688_v60  ;;  %v832_v35 = vmul.f32 0.70710677, %v694_v59  ;;  %v2512_v39 = vmul.f32 %v947_v26, %v2422_v29 }
 0x25b   :  { %v2491_v45 = vpop.f32.mrb[19].mxu0  ;;  %v1920_v50 = vpop.eup %1919  ;;  %v949_v34 = vadd.f32 1.0, %v1918_v58  ;;  %1935 = verf.f32 %v830_v12  ;;  %v831_v16 = vmul.f32 0.70710677, %v583_v62  ;;  %1389 = vmatprep.mubr.bf16.mxu0 %v1063_v8  ;;  %1486 = vmatprep.mubr.bf16.mxu1 %v1065_v17  ;;  %v2514_v36 = vmul.f32 0.5, %v577_v21 }
 0x25c   :  { %v2500_v63 = vpop.f32.mrb[19].mxu1  ;;  %v1922_v18 = vpop.eup %1921  ;;  %v950_v42 = vadd.f32 1.0, %v1920_v50  ;;  %v2516_v30 = vmul.f32 0.5, %v690_v47  ;;  %v833_v40 = vmul.f32 0.70710677, %v696_v1  ;;  %v585_v20 = vadd.f32 %v2436_v15, %v2363_v49  ;;  %1390 = vmatmul.mubr.bf16.vlgmr.msra.gmra.mrb[32].mxu0 %v1062_v28  ;;  %1487 = vmatmul.mubr.bf16.vlgmr.msra.gmra.mrb[32].mxu1 %v1064_v32 }
 0x25d   :  { %v1924_v46 = vpop.eup %1923  ;;  %v952_v14 = vadd.f32 1.0, %v1922_v18  ;;  %1937 = verf.f32 %v832_v35  ;;  %v698_v27 = vadd.f32 %v2438_v43, %v2365_v52  ;;  %v587_v15 = vadd.f32 %v2444_v33, %v2367_v53 }
 0x25e   :  { %v1926_v10 = vpop.eup %1925  ;;  %v2539_v5 = vmul.f32 %v949_v34, %v2424_v31  ;;  %v951_v24 = vadd.f32 1.0, %v1924_v46  ;;  %1939 = verf.f32 %v831_v16  ;;  %v834_v28 = vmul.f32 0.70710677, %v585_v20 }
 0x25f   :  { %v2526_v29 = vpop.f32.mrb[20].mxu0  ;;  %v2528_v60 = vpop.f32.mrb[20].mxu1  ;;  %v2546_v43 = vmul.f32 %v950_v42, %v2448_v55  ;;  %v2548_v33 = vmul.f32 0.5, %v581_v41  ;;  %1941 = verf.f32 %v833_v40  ;;  %v836_v58 = vmul.f32 0.70710677, %v698_v27 }
 0x260   :  { %v2534_v21 = vpop.f32.mrb[21].mxu0  ;;  %v2536_v4 = vpop.f32.mrb[21].mxu1  ;;  %v2552_v31 = vmul.f32 0.5, %v694_v59  ;;  %v2554_v12 = vmul.f32 0.5, %v583_v62  ;;  %v835_v50 = vmul.f32 0.70710677, %v587_v15  ;;  %v700_v8 = vadd.f32 %v2446_v48, %v2369_v54 }
 0x261   :  { %v2541_v32 = vpop.f32.mrb[22].mxu0  ;;  %v2543_v47 = vpop.f32.mrb[22].mxu1  ;;  %v2561_v55 = vmul.f32 %v952_v14, %v2453_v3  ;;  %v2563_v41 = vmul.f32 0.5, %v696_v1  ;;  %1943 = verf.f32 %v834_v28  ;;  %v591_v18 = vadd.f32 %v2468_v61, %v2363_v49 }
 0x262   :  { %v1928_v57 = vpop.eup %1927  ;;  %v2550_v26 = vpop.f32.mrb[23].mxu0  ;;  %v2568_v59 = vmul.f32 %v951_v24, %v2462_v2  ;;  %v953_v62 = vadd.f32 1.0, %v1926_v10  ;;  %1945 = verf.f32 %v836_v58  ;;  %v837_v35 = vmul.f32 0.70710677, %v700_v8 }
 0x263   :  { %v1930_v44 = vpop.eup %1929  ;;  %v2558_v17 = vpop.f32.mrb[23].mxu1  ;;  %v954_v48 = vadd.f32 1.0, %v1928_v57  ;;  %1947 = verf.f32 %v835_v50  ;;  %v838_v16 = vmul.f32 0.70710677, %v591_v18  ;;  %v704_v1 = vadd.f32 %v2470_v22, %v2365_v52 }
 0x264   :  { %v1932_v34 = vpop.eup %1931  ;;  %v956_v42 = vadd.f32 1.0, %v1930_v44  ;;  %1949 = verf.f32 %v837_v35  ;;  %v593_v61 = vadd.f32 %v2478_v25, %v2367_v53  ;;  %v2578_v24 = vmul.f32 0.5, %v585_v20 }
 0x265   :  { %v1934_v46 = vpop.eup %1933  ;;  %v955_v3 = vadd.f32 1.0, %v1932_v34  ;;  %1951 = verf.f32 %v838_v16  ;;  %v706_v28 = vadd.f32 %v2480_v11, %v2369_v54  ;;  %v2587_v22 = vmul.f32 %v953_v62, %v2475_v23 }
 0x266   :  { %v1936_v14 = vpop.eup %1935  ;;  %v957_v10 = vadd.f32 1.0, %v1934_v46  ;;  %v2589_v25 = vmul.f32 0.5, %v698_v27  ;;  %v2591_v44 = vmul.f32 0.5, %v587_v15  ;;  %v840_v50 = vmul.f32 0.70710677, %v704_v1 }
 0x267   :  { %v2574_v40 = vpop.f32.mrb[24].mxu0  ;;  %v2576_v2 = vpop.f32.mrb[24].mxu1  ;;  %v2598_v46 = vmul.f32 %v954_v48, %v2482_v37  ;;  %v2601_v11 = vmul.f32 %v956_v42, %v2509_v6  ;;  %v2603_v16 = vmul.f32 0.5, %v700_v8  ;;  %v2605_v23 = vmul.f32 0.5, %v591_v18 }
 0x268   :  { %v2582_v57 = vpop.f32.mrb[25].mxu0  ;;  %v2584_v58 = vpop.f32.mrb[25].mxu1  ;;  %v1067_v37 = vpack.c.bf16 %v2512_v39, %v2473_v0  ;;  %v2617_v6 = vmul.f32 %v957_v10, %v2516_v30  ;;  %1953 = verf.f32 %v840_v50  ;;  %v841_v8 = vmul.f32 0.70710677, %v706_v28 }
 0x269   :  { %2934 = vst [vmem:[#allocation8_spill] sm:$0xff] %v2584_v58  ;;  %v2593_v34 = vpop.f32.mrb[26].mxu0  ;;  %v2595_v20 = vpop.f32.mrb[26].mxu1  ;;  %v839_v58 = vmul.f32 0.70710677, %v593_v61  ;;  %v1069_v18 = vpack.c.bf16 %v2539_v5, %v2489_v38  ;;  %v1066_v30 = vpack.c.bf16 %v2494_v51, %v2457_v7  ;;  %v1068_v38 = vpack.c.bf16 %v2507_v9, %v2460_v19 }
 0x26a   :  { %2935 = vst [vmem:[#allocation9_spill] sm:$0xff] %v2593_v34  ;;  %2936 = vst [vmem:[#allocation10_spill] sm:$0xff] %v2595_v20  ;;  %v1938_v35 = vpop.eup %1937  ;;  %v2607_v27 = vpop.f32.mrb[27].mxu0  ;;  %v2612_v34 = vmul.f32 %v955_v3, %v2514_v36  ;;  %v958_v20 = vadd.f32 1.0, %v1936_v14  ;;  %1397 = vmatprep.mubr.bf16.mxu0 %v1067_v37  ;;  %v595_v36 = vadd.f32 %v2484_v13, %v2363_v49  ;;  %v2627_v14 = vmul.f32 0.5, %v593_v61 }
 0x26b   :  { %v2609_v15 = vpop.f32.mrb[27].mxu1  ;;  %v1940_v62 = vpop.eup %1939  ;;  %v960_v42 = vadd.f32 1.0, %v1938_v35  ;;  %v708_v3 = vadd.f32 %v2486_v56, %v2365_v52  ;;  %1494 = vmatprep.mubr.bf16.mxu1 %v1069_v18  ;;  %1955 = verf.f32 %v839_v58  ;;  %v2638_v35 = vmul.f32 0.5, %v706_v28  ;;  %1398 = vmatmul.mubr.bf16.gmra.mrb[36].mxu0 %v1066_v30 }
 0x26c   :  { %2937 = vst [vmem:[#allocation11_spill] sm:$0xff] %v2609_v15  ;;  %v1942_v48 = vpop.eup %1941  ;;  %v2621_v15 = vmul.f32 0.5, %v704_v1  ;;  %v959_v39 = vadd.f32 1.0, %v1940_v62  ;;  %v2634_v1 = vmul.f32 %v958_v20, %v2548_v33  ;;  %v842_v13 = vmul.f32 0.70710677, %v595_v36  ;;  %1495 = vmatmul.mubr.bf16.gmra.mrb[36].mxu1 %v1068_v38 }
 0x26d   :  { %v1944_v0 = vpop.eup %1943  ;;  %v961_v10 = vadd.f32 1.0, %v1942_v48  ;;  %1957 = verf.f32 %v841_v8  ;;  %v844_v61 = vmul.f32 0.70710677, %v708_v3  ;;  %v597_v7 = vadd.f32 %v2491_v45, %v2367_v53 }
 0x26e   :  { %v1946_v5 = vpop.eup %1945  ;;  %v2647_v33 = vmul.f32 %v960_v42, %v2552_v31  ;;  %1959 = verf.f32 %v842_v13  ;;  %v710_v28 = vadd.f32 %v2500_v63, %v2369_v54  ;;  %v601_v58 = vadd.f32 %v2526_v29, %v2363_v49 }
 0x26f   :  { %v2636_v50 = vpop.f32.mrb[28].mxu0  ;;  %v1948_v56 = vpop.eup %1947  ;;  %v2658_v37 = vmul.f32 %v959_v39, %v2554_v12  ;;  %v962_v48 = vadd.f32 1.0, %v1944_v0  ;;  %v964_v8 = vadd.f32 1.0, %v1946_v5  ;;  %1961 = verf.f32 %v844_v61 }
 0x270   :  { %v2642_v19 = vpop.f32.mrb[28].mxu1  ;;  %v2644_v51 = vpop.f32.mrb[29].mxu0  ;;  %v2665_v63 = vmul.f32 %v961_v10, %v2563_v41  ;;  %v963_v42 = vadd.f32 1.0, %v1948_v56  ;;  %v843_v29 = vmul.f32 0.70710677, %v597_v7  ;;  %v714_v12 = vadd.f32 %v2528_v60, %v2365_v52 }
 0x271   :  { %v1950_v9 = vpop.eup %1949  ;;  %v2653_v20 = vpop.f32.mrb[29].mxu1  ;;  %v845_v30 = vmul.f32 0.70710677, %v710_v28  ;;  %v846_v39 = vmul.f32 0.70710677, %v601_v58  ;;  %v603_v5 = vadd.f32 %v2534_v21, %v2367_v53  ;;  %v716_v41 = vadd.f32 %v2536_v4, %v2369_v54 }
 0x272   :  { %v2655_v62 = vpop.f32.mrb[30].mxu0  ;;  %v1952_v45 = vpop.eup %1951  ;;  %v965_v38 = vadd.f32 1.0, %v1950_v9  ;;  %1963 = verf.f32 %v843_v29  ;;  %v2678_v56 = vmul.f32 %v962_v48, %v2578_v24  ;;  %v780_v61 = vmul.f32 0.5, %v708_v3 }
 0x273   :  { %2938 = vst [vmem:[#allocation12_spill] sm:$0xff] %v2655_v62  ;;  %v2660_v31 = vpop.f32.mrb[30].mxu1  ;;  %v2662_v18 = vpop.f32.mrb[31].mxu0  ;;  %v966_v13 = vadd.f32 1.0, %v1952_v45  ;;  %v2667_v62 = vmul.f32 0.5, %v595_v36  ;;  %v2681_v36 = vmul.f32 %v964_v8, %v2589_v25  ;;  %v2684_v60 = vmul.f32 %v963_v42, %v2591_v44 }
 0x274   :  { %v2671_v0 = vpop.f32.mrb[31].mxu1  ;;  %v1954_v10 = vpop.eup %1953  ;;  %v848_v9 = vmul.f32 0.70710677, %v714_v12  ;;  %v2686_v45 = vmul.f32 0.5, %v597_v7  ;;  %1965 = verf.f32 %v845_v30  ;;  %v847_v29 = vmul.f32 0.70710677, %v603_v5 }
 0x275   :  { %v2689_v21 = vmul.f32 %v965_v38, %v2603_v16  ;;  %v2692_v4 = vmul.f32 %v966_v13, %v2605_v23  ;;  %v2694_v24 = vmul.f32 0.5, %v710_v28  ;;  %v2696_v48 = vmul.f32 0.5, %v601_v58  ;;  %v1956_v25 = vpop.eup %1955 }
 0x276   :  { %v968_v3 = vadd.f32 1.0, %v1954_v10  ;;  %1967 = verf.f32 %v846_v39  ;;  %v849_v8 = vmul.f32 0.70710677, %v716_v41  ;;  %v1071_v44 = vpack.c.bf16 %v2612_v34, %v2568_v59 }
 0x277   :  { %v1958_v7 = vpop.eup %1957  ;;  %1969 = verf.f32 %v848_v9  ;;  %v1073_v16 = vpack.c.bf16 %v2617_v6, %v2587_v22  ;;  %v605_v23 = vadd.f32 %v2541_v32, %v2363_v49  ;;  %v718_v28 = vadd.f32 %v2543_v47, %v2365_v52 }
 0x278   :  { %v1960_v58 = vpop.eup %1959  ;;  %1971 = verf.f32 %v847_v29  ;;  %1405 = vmatprep.mubr.bf16.mxu0 %v1071_v44  ;;  %v1070_v42 = vpack.c.bf16 %v2598_v46, %v2546_v43  ;;  %v1072_v59 = vpack.c.bf16 %v2601_v11, %v2561_v55  ;;  %v607_v34 = vadd.f32 %v2550_v26, %v2367_v53 }
 0x279   :  { %v1962_v30 = vpop.eup %1961  ;;  %v967_v22 = vadd.f32 1.0, %v1956_v25  ;;  %v2712_v6 = vmul.f32 0.5, %v714_v12  ;;  %1973 = verf.f32 %v849_v8  ;;  %1502 = vmatprep.mubr.bf16.mxu1 %v1073_v16  ;;  %v850_v32 = vmul.f32 0.70710677, %v605_v23 }
 0x27a   :  { %v969_v47 = vadd.f32 1.0, %v1958_v7  ;;  %v2714_v38 = vmul.f32 0.5, %v603_v5  ;;  %v852_v13 = vmul.f32 0.70710677, %v718_v28  ;;  %1406 = vmatmul.mubr.bf16.gmra.mrb[40].mxu0 %v1070_v42  ;;  %1503 = vmatmul.mubr.bf16.gmra.mrb[40].mxu1 %v1072_v59  ;;  %v851_v43 = vmul.f32 0.70710677, %v607_v34 }
 0x27b   :  { %v2717_v46 = vmul.f32 %v968_v3, %v2621_v15  ;;  %1975 = verf.f32 %v850_v32  ;;  %v720_v26 = vadd.f32 %v2558_v17, %v2369_v54  ;;  %v611_v55 = vadd.f32 %v2574_v40, %v2363_v49 }
 0x27c   :  { %v1964_v11 = vpop.eup %1963  ;;  %v970_v12 = vadd.f32 1.0, %v1960_v58  ;;  %v972_v39 = vadd.f32 1.0, %v1962_v30  ;;  %1977 = verf.f32 %v852_v13  ;;  %v724_v5 = vadd.f32 %v2576_v2, %v2365_v52  ;;  %v2939_v30 = vld [vmem:[#allocation8_spill] sm:$0xff]  ;;  %v2940_v13 = vld [vmem:[#allocation9_spill] sm:$0xff] }
 0x27d   :  { %v2725_v10 = vmul.f32 0.5, %v716_v41  ;;  %1979 = verf.f32 %v851_v43  ;;  %v853_v9 = vmul.f32 0.70710677, %v720_v26  ;;  %v613_v15 = vadd.f32 %v2582_v57, %v2367_v53 }
 0x27e   :  { %v1966_v29 = vpop.eup %1965  ;;  %v2730_v17 = vmul.f32 %v967_v22, %v2627_v14  ;;  %v2733_v40 = vmul.f32 %v969_v47, %v2638_v35  ;;  %v2735_v25 = vmul.f32 0.5, %v605_v23  ;;  %v854_v3 = vmul.f32 0.70710677, %v611_v55 }
 0x27f   :  { %v971_v8 = vadd.f32 1.0, %v1964_v11  ;;  %v2737_v44 = vmul.f32 0.5, %v718_v28  ;;  %1981 = verf.f32 %v853_v9  ;;  %v856_v2 = vmul.f32 0.70710677, %v724_v5  ;;  %v2941_v11 = vld [vmem:[#allocation10_spill] sm:$0xff] }
 0x280   :  { %v1968_v41 = vpop.eup %1967  ;;  %v2740_v7 = vmul.f32 %v970_v12, %v2667_v62  ;;  %v2742_v57 = vmul.f32 %v972_v39, %v780_v61  ;;  %v2744_v16 = vmul.f32 0.5, %v607_v34  ;;  %1983 = verf.f32 %v854_v3 }
 0x281   :  { %v1970_v14 = vpop.eup %1969  ;;  %v973_v35 = vadd.f32 1.0, %v1966_v29  ;;  %v2746_v58 = vmul.f32 0.5, %v720_v26  ;;  %v2748_v23 = vmul.f32 0.5, %v611_v55  ;;  %v855_v42 = vmul.f32 0.70710677, %v613_v15 }
 0x282   :  { %v1972_v28 = vpop.eup %1971  ;;  %v2750_v59 = vmul.f32 0.5, %v724_v5  ;;  %v726_v22 = vadd.f32 %v2939_v30, %v2369_v54  ;;  %v1075_v62 = vpack.c.bf16 %v2684_v60, %v2658_v37  ;;  %v1077_v61 = vpack.c.bf16 %v2689_v21, %v2665_v63 }
 0x283   :  { %v1974_v34 = vpop.eup %1973  ;;  %v2759_v32 = vmul.f32 %v971_v8, %v2686_v45  ;;  %v974_v47 = vadd.f32 1.0, %v1968_v41  ;;  %1985 = verf.f32 %v856_v2  ;;  %v615_v43 = vadd.f32 %v2940_v13, %v2363_v49 }
 0x284   :  { %v976_v26 = vadd.f32 1.0, %v1970_v14  ;;  %v857_v55 = vmul.f32 0.70710677, %v726_v22  ;;  %1413 = vmatprep.mubr.bf16.mxu0 %v1075_v62  ;;  %1510 = vmatprep.mubr.bf16.mxu1 %v1077_v61  ;;  %v728_v12 = vadd.f32 %v2941_v11, %v2365_v52  ;;  %v1074_v37 = vpack.c.bf16 %v2678_v56, %v2634_v1  ;;  %v2942_v56 = vld [vmem:[#allocation11_spill] sm:$0xff] }
 0x285   :  { %v1976_v63 = vpop.eup %1975  ;;  %v975_v60 = vadd.f32 1.0, %v1972_v28  ;;  %1987 = verf.f32 %v855_v42  ;;  %v858_v45 = vmul.f32 0.70710677, %v615_v43  ;;  %v1076_v21 = vpack.c.bf16 %v2681_v36, %v2647_v33 }
 0x286   :  { %v1978_v39 = vpop.eup %1977  ;;  %v1037_v5 = vmul.f32 %v973_v35, %v2694_v24  ;;  %v977_v9 = vadd.f32 1.0, %v1974_v34  ;;  %1989 = verf.f32 %v857_v55  ;;  %v860_v29 = vmul.f32 0.70710677, %v728_v12  ;;  %1414 = vmatmul.mubr.bf16.gmra.mrb[44].mxu0 %v1074_v37 }
 0x287   :  { %v1980_v3 = vpop.eup %1979  ;;  %v2770_v8 = vmul.f32 0.5, %v613_v15  ;;  %1991 = verf.f32 %v858_v45  ;;  %1511 = vmatmul.mubr.bf16.gmra.mrb[44].mxu1 %v1076_v21  ;;  %v617_v1 = vadd.f32 %v2607_v27, %v2367_v53  ;;  %v730_v2 = vadd.f32 %v2942_v56, %v2369_v54 }
 0x288   :  { %v2777_v33 = vmul.f32 %v974_v47, %v2696_v48  ;;  %v2780_v36 = vmul.f32 %v976_v26, %v2712_v6  ;;  %1993 = verf.f32 %v860_v29  ;;  %v2784_v24 = vadd.f32 %v2636_v50, %v2363_v49 }
 0x289   :  { %v1982_v15 = vpop.eup %1981  ;;  %v2787_v41 = vmul.f32 %v975_v60, %v2714_v38  ;;  %v978_v14 = vadd.f32 1.0, %v1976_v63  ;;  %v980_v27 = vadd.f32 1.0, %v1978_v39  ;;  %v859_v35 = vmul.f32 0.70710677, %v617_v1 }
 0x28a   :  { %v1984_v42 = vpop.eup %1983  ;;  %v2790_v28 = vmul.f32 %v977_v9, %v2725_v10  ;;  %v979_v48 = vadd.f32 1.0, %v1980_v3  ;;  %v2792_v30 = vmul.f32 0.5, %v726_v22  ;;  %v861_v6 = vmul.f32 0.70710677, %v730_v2 }
 0x28b   :  { %v981_v62 = vadd.f32 1.0, %v1982_v15  ;;  %v794_v61 = vmul.f32 0.5, %v615_v43  ;;  %1995 = verf.f32 %v859_v35  ;;  %v2796_v50 = vadd.f32 %v2642_v19, %v2365_v52 }
 0x28c   :  { %v796_v38 = vmul.f32 0.5, %v728_v12  ;;  %1997 = verf.f32 %v861_v6  ;;  %v862_v34 = vmul.f32 0.70710677, %v2784_v24  ;;  %v2801_v47 = vadd.f32 %v2644_v51, %v2367_v53 }
 0x28d   :  { %v1986_v10 = vpop.eup %1985  ;;  %v2804_v22 = vmul.f32 %v978_v14, %v2735_v25  ;;  %v2807_v13 = vmul.f32 %v980_v27, %v2737_v44  ;;  %v982_v43 = vadd.f32 1.0, %v1984_v42  ;;  %v864_v26 = vmul.f32 0.70710677, %v2796_v50 }
 0x28e   :  { %v1043_v19 = vmul.f32 %v979_v48, %v2744_v16  ;;  %v795_v55 = vmul.f32 0.5, %v617_v1  ;;  %v797_v11 = vmul.f32 0.5, %v730_v2  ;;  %v863_v12 = vmul.f32 0.70710677, %v2801_v47  ;;  %v2943_v16 = vld [vmem:[#allocation12_spill] sm:$0xff] }
 0x28f   :  { %v1988_v37 = vpop.eup %1987  ;;  %v1045_v51 = vmul.f32 %v981_v62, %v2746_v58  ;;  %v2815_v63 = vadd.f32 %v2653_v20, %v2369_v54  ;;  %v1079_v25 = vpack.c.bf16 %v2759_v32, %v2730_v17  ;;  %v1081_v44 = vpack.c.bf16 %v1037_v5, %v2733_v40 }
 0x290   :  { %v1990_v60 = vpop.eup %1989  ;;  %v984_v45 = vadd.f32 1.0, %v1986_v10  ;;  %1999 = verf.f32 %v862_v34  ;;  %v625_v21 = vadd.f32 %v2943_v16, %v2363_v49  ;;  %v2824_v39 = vadd.f32 %v2660_v31, %v2365_v52 }
 0x291   :  { %v1992_v58 = vpop.eup %1991  ;;  %v2827_v9 = vmul.f32 %v982_v43, %v2748_v23  ;;  %2001 = verf.f32 %v864_v26  ;;  %v865_v20 = vmul.f32 0.70710677, %v2815_v63  ;;  %1421 = vmatprep.mubr.bf16.mxu0 %v1079_v25  ;;  %1518 = vmatprep.mubr.bf16.mxu1 %v1081_v44  ;;  %v1078_v17 = vpack.c.bf16 %v2740_v7, %v2692_v4 }
 0x292   :  { %v1994_v40 = vpop.eup %1993  ;;  %v983_v32 = vadd.f32 1.0, %v1988_v37  ;;  %v986_v5 = vadd.f32 1.0, %v1992_v58  ;;  %2003 = verf.f32 %v863_v12  ;;  %v866_v49 = vmul.f32 0.70710677, %v625_v21 }
 0x293   :  { %v985_v29 = vadd.f32 1.0, %v1990_v60  ;;  %v988_v52 = vadd.f32 1.0, %v1994_v40  ;;  %2005 = verf.f32 %v865_v20  ;;  %v868_v31 = vmul.f32 0.70710677, %v2824_v39  ;;  %1422 = vmatmul.mubr.bf16.gmra.mrb[48].mxu0 %v1078_v17 }
 0x294   :  { %v1050_v23 = vmul.f32 %v986_v5, %v794_v61  ;;  %2007 = verf.f32 %v866_v49  ;;  %v1080_v3 = vpack.c.bf16 %v2742_v57, %v2717_v46  ;;  %v627_v1 = vadd.f32 %v2662_v18, %v2367_v53 }
 0x295   :  { %v1996_v4 = vpop.eup %1995  ;;  %v2837_v7 = vmul.f32 %v988_v52, %v796_v38  ;;  %2009 = verf.f32 %v868_v31  ;;  %v740_v56 = vadd.f32 %v2671_v0, %v2369_v54  ;;  %v1083_v2 = vpack.c.bf16 %v1043_v19, %v2787_v41 }
 0x296   :  { %v1998_v15 = vpop.eup %1997  ;;  %v1048_v14 = vmul.f32 %v984_v45, %v2750_v59  ;;  %v987_v27 = vadd.f32 1.0, %v1996_v4  ;;  %1519 = vmatmul.mubr.bf16.gmra.mrb[48].mxu1 %v1080_v3  ;;  %v867_v35 = vmul.f32 0.70710677, %v627_v1  ;;  %v1085_v46 = vpack.c.bf16 %v1045_v51, %v2790_v28 }
 0x297   :  { %v1047_v57 = vmul.f32 %v983_v32, %v2770_v8  ;;  %v989_v53 = vadd.f32 1.0, %v1998_v15  ;;  %v869_v18 = vmul.f32 0.70710677, %v740_v56  ;;  %1429 = vmatprep.mubr.bf16.mxu0 %v1083_v2  ;;  %v1082_v42 = vpack.c.bf16 %v2804_v22, %v2777_v33 }
 0x298   :  { %v1049_v54 = vmul.f32 %v985_v29, %v2792_v30  ;;  %v1051_v0 = vmul.f32 %v987_v27, %v795_v55  ;;  %2011 = verf.f32 %v867_v35  ;;  %1526 = vmatprep.mubr.bf16.mxu1 %v1085_v46  ;;  %v1084_v59 = vpack.c.bf16 %v2807_v13, %v2780_v36 }
 0x299   :  { %v1053_v41 = vmul.f32 %v989_v53, %v797_v11  ;;  %2013 = verf.f32 %v869_v18  ;;  %v1086_v28 = vpack.c.bf16 %v1050_v23, %v2827_v9  ;;  %v1088_v8 = vpack.c.bf16 %v2837_v7, %v1048_v14 }
 0x29a   :  { %v2000_v48 = vpop.eup %1999  ;;  %v1087_v6 = vpack.c.bf16 %v1051_v0, %v1047_v57  ;;  %v798_v36 = vmul.f32 0.5, %v2784_v24  ;;  %v802_v13 = vmul.f32 0.5, %v625_v21  ;;  %v800_v26 = vmul.f32 0.5, %v2796_v50 }
 0x29b   :  { %v2002_v62 = vpop.eup %2001  ;;  %1430 = vmatmul.mubr.bf16.gmra.mrb[52].mxu0 %v1082_v42  ;;  %v1089_v61 = vpack.c.bf16 %v1053_v41, %v1049_v54  ;;  %v990_v38 = vadd.f32 1.0, %v2000_v48  ;;  %v804_v19 = vmul.f32 0.5, %v2824_v39  ;;  %v799_v16 = vmul.f32 0.5, %v2801_v47 }
 0x29c   :  { %v2004_v33 = vpop.eup %2003  ;;  %1437 = vmatprep.mubr.bf16.mxu0 %v1087_v6  ;;  %v992_v10 = vadd.f32 1.0, %v2002_v62  ;;  %v803_v58 = vmul.f32 0.5, %v627_v1  ;;  %v801_v9 = vmul.f32 0.5, %v2815_v63  ;;  %v805_v50 = vmul.f32 0.5, %v740_v56  ;;  %v2860_v63 = vld [vmem:[%s2932_s6] ss:$0 sm:$0xff] }
 0x29d   :  { %v2006_v30 = vpop.eup %2005  ;;  %v1054_v11 = vmul.f32 %v990_v38, %v798_v36  ;;  %v991_v12 = vadd.f32 1.0, %v2004_v33 }
 0x29e   :  { %v2008_v34 = vpop.eup %2007  ;;  %1527 = vmatmul.mubr.bf16.gmra.mrb[52].mxu1 %v1084_v59  ;;  %v1056_v25 = vmul.f32 %v992_v10, %v800_v26  ;;  %v993_v44 = vadd.f32 1.0, %v2006_v30 }
 0x29f   :  { %v2010_v22 = vpop.eup %2009  ;;  %v994_v43 = vadd.f32 1.0, %v2008_v34  ;;  %1534 = vmatprep.mubr.bf16.mxu1 %v1089_v61  ;;  %v1055_v17 = vmul.f32 %v991_v12, %v799_v16 }
 0x2a0   :  { %v996_v55 = vadd.f32 1.0, %v2010_v22  ;;  %v1057_v32 = vmul.f32 %v993_v44, %v801_v9 }
 0x2a1   :  { %v1058_v37 = vmul.f32 %v994_v43, %v802_v13 }
 0x2a2   :  { %v2012_v51 = vpop.eup %2011  ;;  %v1060_v60 = vmul.f32 %v996_v55, %v804_v19 }
 0x2a3   :  { %v2014_v45 = vpop.eup %2013  ;;  %v995_v24 = vadd.f32 1.0, %v2012_v51  ;;  %1438 = vmatmul.mubr.bf16.gmra.mrb[56].mxu0 %v1086_v28  ;;  %v1090_v21 = vpack.c.bf16 %v1058_v37, %v1054_v11 }
 0x2a4   :  { %v997_v20 = vadd.f32 1.0, %v2014_v45  ;;  %v1092_v39 = vpack.c.bf16 %v1060_v60, %v1056_v25 }
 0x2a5   :  { %v1059_v40 = vmul.f32 %v995_v24, %v803_v58 }
 0x2a6   :  { %v1061_v5 = vmul.f32 %v997_v20, %v805_v50  ;;  %1535 = vmatmul.mubr.bf16.gmra.mrb[56].mxu1 %v1088_v8 }
 0x2a7   :  { %v1091_v49 = vpack.c.bf16 %v1059_v40, %v1055_v17 }
 0x2a8   :  { %v1093_v29 = vpack.c.bf16 %v1061_v5, %v1057_v32 }
 0x2a9   :  { %1445 = vmatprep.mubr.bf16.mxu0 %v1091_v49 }
 0x2aa   :  { %1542 = vmatprep.mubr.bf16.mxu1 %v1093_v29 }
 0x2ab   :  { %1446 = vmatmul.mubr.bf16.gmra.mrb[60].mxu0 %v1090_v21 }
 0x2ae   :  { %1543 = vmatmul.mubr.bf16.gmra.mrb[60].mxu1 %v1092_v39 }
 0x32f   :  { %v1656_v47 = vpop.f32.mrb[32].mxu0  ;;  %v1720_v52 = vpop.f32.mrb[32].mxu1 }
 0x330   :  { %v1657_v31 = vpop.f32.mrb[33].mxu0  ;;  %v1721_v23 = vpop.f32.mrb[33].mxu1 }
 0x331   :  { %v1658_v3 = vadd.f32 %v1657_v31, %v1656_v47  ;;  %v1722_v1 = vadd.f32 %v1721_v23, %v1720_v52  ;;  %v1659_v4 = vpop.f32.mrb[34].mxu0  ;;  %v1723_v7 = vpop.f32.mrb[34].mxu1 }
 0x332   :  { %v1660_v56 = vpop.f32.mrb[35].mxu0  ;;  %v1724_v2 = vpop.f32.mrb[35].mxu1 }
 0x333   :  { %v1392_v15 = vadd.f32 %v1658_v3, %v2860_v63  ;;  %v1661_v14 = vadd.f32 %v1660_v56, %v1659_v4  ;;  %v1725_v27 = vadd.f32 %v1724_v2, %v1723_v7 }
 0x335   :  { %v1489_v35 = vadd.f32 %v1722_v1, %v1392_v15  ;;  %v1395_v46 = vadd.f32 %v1661_v14, %v2860_v63 }
 0x337   :  { %1551 = vst [vmem:[%s2933_s7] sm:$0xff] %v1489_v35  ;;  %v1492_v57 = vadd.f32 %v1725_v27, %v1395_v46 }
 0x339   :  { %1552 = vst [vmem:[%s2933_s7 + $0x8] sm:$0xff] %v1492_v57 }
 0x33e   :  { %v1662_v53 = vpop.f32.mrb[36].mxu0 }
 0x33f   :  { %v1726_v18 = vpop.f32.mrb[36].mxu1  ;;  %v1663_v42 = vpop.f32.mrb[37].mxu0 }
 0x340   :  { %v1727_v54 = vpop.f32.mrb[37].mxu1  ;;  %v1664_v0 = vadd.f32 %v1663_v42, %v1662_v53  ;;  %v1665_v41 = vpop.f32.mrb[38].mxu0 }
 0x341   :  { %v1728_v59 = vadd.f32 %v1727_v54, %v1726_v18  ;;  %v1729_v28 = vpop.f32.mrb[38].mxu1  ;;  %v1666_v8 = vpop.f32.mrb[39].mxu0 }
 0x342   :  { %v1730_v48 = vpop.f32.mrb[39].mxu1  ;;  %v1400_v6 = vadd.f32 %v1664_v0, %v2860_v63  ;;  %v1667_v62 = vadd.f32 %v1666_v8, %v1665_v41 }
 0x343   :  { %v1731_v61 = vadd.f32 %v1730_v48, %v1729_v28 }
 0x344   :  { %v1497_v33 = vadd.f32 %v1728_v59, %v1400_v6  ;;  %v1403_v30 = vadd.f32 %v1667_v62, %v2860_v63 }
 0x346   :  { %1553 = vst [vmem:[%s2933_s7 + $0x10] sm:$0xff] %v1497_v33  ;;  %v1500_v38 = vadd.f32 %v1731_v61, %v1403_v30 }
 0x348   :  { %1554 = vst [vmem:[%s2933_s7 + $0x18] sm:$0xff] %v1500_v38 }
 0x34d   :  { %v1668_v34 = vpop.f32.mrb[40].mxu0  ;;  %v1732_v10 = vpop.f32.mrb[40].mxu1 }
 0x34e   :  { %v1669_v22 = vpop.f32.mrb[41].mxu0  ;;  %v1733_v36 = vpop.f32.mrb[41].mxu1 }
 0x34f   :  { %v1670_v13 = vadd.f32 %v1669_v22, %v1668_v34  ;;  %v1734_v43 = vadd.f32 %v1733_v36, %v1732_v10  ;;  %v1671_v26 = vpop.f32.mrb[42].mxu0  ;;  %v1735_v19 = vpop.f32.mrb[42].mxu1 }
 0x350   :  { %v1672_v55 = vpop.f32.mrb[43].mxu0  ;;  %v1736_v11 = vpop.f32.mrb[43].mxu1 }
 0x351   :  { %v1408_v12 = vadd.f32 %v1670_v13, %v2860_v63  ;;  %v1673_v37 = vadd.f32 %v1672_v55, %v1671_v26  ;;  %v1737_v51 = vadd.f32 %v1736_v11, %v1735_v19 }
 0x353   :  { %v1505_v25 = vadd.f32 %v1734_v43, %v1408_v12  ;;  %v1411_v44 = vadd.f32 %v1673_v37, %v2860_v63 }
 0x355   :  { %1555 = vst [vmem:[%s2933_s7 + $0x20] sm:$0xff] %v1505_v25  ;;  %v1508_v60 = vadd.f32 %v1737_v51, %v1411_v44 }
 0x357   :  { %1556 = vst [vmem:[%s2933_s7 + $0x28] sm:$0xff] %v1508_v60 }
 0x359   :  { %v1674_v45 = vpop.f32.mrb[44].mxu0 }
 0x35a   :  { %v1738_v16 = vpop.f32.mrb[44].mxu1  ;;  %v1675_v58 = vpop.f32.mrb[45].mxu0 }
 0x35b   :  { %v1676_v24 = vadd.f32 %v1675_v58, %v1674_v45  ;;  %v1739_v21 = vpop.f32.mrb[45].mxu1  ;;  %v1677_v9 = vpop.f32.mrb[46].mxu0 }
 0x35c   :  { %v1740_v50 = vadd.f32 %v1739_v21, %v1738_v16  ;;  %v1741_v20 = vpop.f32.mrb[46].mxu1  ;;  %v1678_v39 = vpop.f32.mrb[47].mxu0 }
 0x35d   :  { %v1416_v17 = vadd.f32 %v1676_v24, %v2860_v63  ;;  %v1679_v40 = vadd.f32 %v1678_v39, %v1677_v9  ;;  %v1742_v32 = vpop.f32.mrb[47].mxu1 }
 0x35e   :  { %v1743_v5 = vadd.f32 %v1742_v32, %v1741_v20 }
 0x35f   :  { %v1513_v49 = vadd.f32 %v1740_v50, %v1416_v17  ;;  %v1419_v29 = vadd.f32 %v1679_v40, %v2860_v63 }
 0x361   :  { %1557 = vst [vmem:[%s2933_s7 + $0x30] sm:$0xff] %v1513_v49  ;;  %v1516_v47 = vadd.f32 %v1743_v5, %v1419_v29 }
 0x363   :  { %1558 = vst [vmem:[%s2933_s7 + $0x38] sm:$0xff] %v1516_v47 }
 0x366   :  { %v1680_v52 = vpop.f32.mrb[48].mxu0 }
 0x367   :  { %v1681_v31 = vpop.f32.mrb[49].mxu0 }
 0x368   :  { %v1682_v23 = vadd.f32 %v1681_v31, %v1680_v52  ;;  %v1683_v3 = vpop.f32.mrb[50].mxu0 }
 0x369   :  { %v1744_v1 = vpop.f32.mrb[48].mxu1  ;;  %v1684_v4 = vpop.f32.mrb[51].mxu0 }
 0x36a   :  { %v1424_v7 = vadd.f32 %v1682_v23, %v2860_v63  ;;  %v1745_v56 = vpop.f32.mrb[49].mxu1  ;;  %v1685_v2 = vadd.f32 %v1684_v4, %v1683_v3 }
 0x36b   :  { %v1746_v15 = vadd.f32 %v1745_v56, %v1744_v1  ;;  %v1747_v14 = vpop.f32.mrb[50].mxu1 }
 0x36c   :  { %v1427_v27 = vadd.f32 %v1685_v2, %v2860_v63  ;;  %v1748_v35 = vpop.f32.mrb[51].mxu1 }
 0x36d   :  { %v1521_v46 = vadd.f32 %v1746_v15, %v1424_v7  ;;  %v1749_v57 = vadd.f32 %v1748_v35, %v1747_v14 }
 0x36e   :  { %v1686_v53 = vpop.f32.mrb[52].mxu0 }
 0x36f   :  { %1559 = vst [vmem:[%s2933_s7 + $0x40] sm:$0xff] %v1521_v46  ;;  %v1524_v18 = vadd.f32 %v1749_v57, %v1427_v27  ;;  %v1687_v42 = vpop.f32.mrb[53].mxu0 }
 0x370   :  { %v1688_v54 = vadd.f32 %v1687_v42, %v1686_v53  ;;  %v1689_v0 = vpop.f32.mrb[54].mxu0 }
 0x371   :  { %1560 = vst [vmem:[%s2933_s7 + $0x48] sm:$0xff] %v1524_v18  ;;  %v1750_v59 = vpop.f32.mrb[52].mxu1  ;;  %v1690_v41 = vpop.f32.mrb[55].mxu0 }
 0x372   :  { %v1432_v28 = vadd.f32 %v1688_v54, %v2860_v63  ;;  %v1751_v8 = vpop.f32.mrb[53].mxu1  ;;  %v1691_v48 = vadd.f32 %v1690_v41, %v1689_v0 }
 0x373   :  { %v1752_v6 = vadd.f32 %v1751_v8, %v1750_v59  ;;  %v1753_v62 = vpop.f32.mrb[54].mxu1 }
 0x374   :  { %v1435_v61 = vadd.f32 %v1691_v48, %v2860_v63  ;;  %v1754_v33 = vpop.f32.mrb[55].mxu1 }
 0x375   :  { %v1529_v30 = vadd.f32 %v1752_v6, %v1432_v28  ;;  %v1755_v38 = vadd.f32 %v1754_v33, %v1753_v62 }
 0x376   :  { %v1692_v34 = vpop.f32.mrb[56].mxu0 }
 0x377   :  { %1561 = vst [vmem:[%s2933_s7 + $0x50] sm:$0xff] %v1529_v30  ;;  %v1532_v10 = vadd.f32 %v1755_v38, %v1435_v61  ;;  %v1693_v22 = vpop.f32.mrb[57].mxu0 }
 0x378   :  { %v1694_v36 = vadd.f32 %v1693_v22, %v1692_v34  ;;  %v1695_v13 = vpop.f32.mrb[58].mxu0 }
 0x379   :  { %1562 = vst [vmem:[%s2933_s7 + $0x58] sm:$0xff] %v1532_v10  ;;  %v1756_v43 = vpop.f32.mrb[56].mxu1  ;;  %v1696_v26 = vpop.f32.mrb[59].mxu0 }
 0x37a   :  { %v1440_v19 = vadd.f32 %v1694_v36, %v2860_v63  ;;  %v1757_v55 = vpop.f32.mrb[57].mxu1  ;;  %v1697_v11 = vadd.f32 %v1696_v26, %v1695_v13 }
 0x37b   :  { %v1758_v12 = vadd.f32 %v1757_v55, %v1756_v43  ;;  %v1759_v37 = vpop.f32.mrb[58].mxu1 }
 0x37c   :  { %v1443_v51 = vadd.f32 %v1697_v11, %v2860_v63  ;;  %v1760_v25 = vpop.f32.mrb[59].mxu1 }
 0x37d   :  { %v1537_v44 = vadd.f32 %v1758_v12, %v1440_v19  ;;  %v1761_v60 = vadd.f32 %v1760_v25, %v1759_v37 }
 0x37e   :  { %v1698_v45 = vpop.f32.mrb[60].mxu0 }
 0x37f   :  { %1563 = vst [vmem:[%s2933_s7 + $0x60] sm:$0xff] %v1537_v44  ;;  %v1540_v16 = vadd.f32 %v1761_v60, %v1443_v51  ;;  %v1699_v58 = vpop.f32.mrb[61].mxu0 }
 0x380   :  { %v1700_v24 = vadd.f32 %v1699_v58, %v1698_v45  ;;  %v1701_v21 = vpop.f32.mrb[62].mxu0 }
 0x381   :  { %1564 = vst [vmem:[%s2933_s7 + $0x68] sm:$0xff] %v1540_v16  ;;  %v1762_v9 = vpop.f32.mrb[60].mxu1  ;;  %v1702_v50 = vpop.f32.mrb[63].mxu0 }
 0x382   :  { %v1448_v20 = vadd.f32 %v1700_v24, %v2860_v63  ;;  %v1763_v39 = vpop.f32.mrb[61].mxu1  ;;  %v1703_v17 = vadd.f32 %v1702_v50, %v1701_v21 }
 0x383   :  { %v1764_v40 = vadd.f32 %v1763_v39, %v1762_v9  ;;  %v1765_v32 = vpop.f32.mrb[62].mxu1 }
 0x384   :  { %v1451_v5 = vadd.f32 %v1703_v17, %v2860_v63  ;;  %v1766_v49 = vpop.f32.mrb[63].mxu1 }
 0x385   :  { %v1545_v29 = vadd.f32 %v1764_v40, %v1448_v20  ;;  %v1767_v47 = vadd.f32 %v1766_v49, %v1765_v32 }
 0x387   :  { %1565 = vst [vmem:[%s2933_s7 + $0x70] sm:$0xff] %v1545_v29  ;;  %v1548_v52 = vadd.f32 %v1767_v47, %v1451_v5 }
 0x389   :  { %1566 = vst [vmem:[%s2933_s7 + $0x78] sm:$0xff] %v1548_v52 }
 0x38a   :  { %1571 = vsyncpa [#allocation3], 1 }
 0x38b   :  { %1572 = vsyncpa [#allocation5], 1 }

</bundles_post_ra>
